<compile_context>
chip_gen: v6e
topology: v6e:2x2x1
jax: 0.10.0
libtpu: 0.0.40
codegen_flags: <defaults>
</compile_context>

<pallas_src>
import math
import functools

import jax
import jax.numpy as jnp
from jax.experimental import pallas as pl
from jax.experimental.pallas import tpu as pltpu

N_LEVELS = 4


# ----------------------------- in-kernel helpers -----------------------------

def _erf(x):
    # Abramowitz & Stegun 7.1.26 (|err| < 1.5e-7) -> GELU exact to f32 noise.
    a1, a2, a3, a4, a5 = (0.254829592, -0.284496736, 1.421413741,
                          -1.453152027, 1.061405429)
    p = 0.3275911
    sgn = jnp.where(x >= 0.0, 1.0, -1.0)
    ax = jnp.abs(x)
    t = 1.0 / (1.0 + p * ax)
    poly = ((((a5 * t + a4) * t + a3) * t + a2) * t + a1) * t
    return sgn * (1.0 - poly * jnp.exp(-ax * ax))


def _gelu(x):
    # nn.GELU() default (exact, erf-based).  The exp goes to the EUP slot; the
    # small polynomial is VPU filler under the MXU/XLU work of the main body.
    return 0.5 * x * (1.0 + _erf(x * (1.0 / math.sqrt(2.0))))


def _shift_flat(v, off, p_len):
    """result[p] = v[p + off] (modular wrap; callers mask invalid positions)."""
    if off == 0:
        return v
    return pltpu.roll(v, (-off) % p_len, 1)


def _block_max(field, take_up, n_bits, stride, p_len):
    """Replicated aligned block-max along one axis: after n_bits butterfly
    rounds every element holds the max over its aligned 2**n_bits block.
    take_up[j] is the hoisted (1, P) mask `coord bit j == 0`, i.e. whether the
    XOR partner sits at +2**j (else -2**j).  Blocks are aligned and divide the
    axis, so the selected partner never wraps -> no extra masks."""
    for j in range(n_bits):
        t = (1 << j) * stride
        up = _shift_flat(field, t, p_len)    # value at p + t
        dn = _shift_flat(field, -t, p_len)   # value at p - t
        field = jnp.maximum(field, jnp.where(take_up[j], up, dn))
    return field


# --------------------------------- kernel ------------------------------------

def _safm_kernel(x_ref, row_ref, col_ref, dww_ref, agw_ref, bias_ref, o_ref,
                 *, hh, ww, cd, n_levels):
    P = hh * ww
    x = x_ref[0]            # (C, P) f32, channel-major, spatial dense in lanes
    row = row_ref[...]      # (1, P) int32 : p // W
    col = col_ref[...]      # (1, P) int32 : p %  W

    # Butterfly partner-direction masks, hoisted once and shared by all levels.
    nbits = max(n_levels - 1, 1)
    col_up = [(col & (1 << j)) == 0 for j in range(nbits)]
    row_up = [(row & (1 << j)) == 0 for j in range(nbits)]

    s_parts = []
    for lvl in range(n_levels):
        k = 1 << lvl
        field = x[lvl * cd:(lvl + 1) * cd, :]           # (cd, P) channel chunk

        # adaptive_max_pool2d(k x k) + nearest upsample, fused in place:
        # every fine pixel ends up holding the max of its aligned k x k block.
        if lvl > 0:
            field = _block_max(field, col_up, lvl, 1, P)    # horizontal
            field = _block_max(field, row_up, lvl, ww, P)   # vertical

        # depthwise 3x3 (stride 1, zero-pad 1) on the coarse grid followed by
        # nearest upsample == k-strided masked taps on the replicated field.
        # One-sided border masks; centre row/col taps need none.
        row_ok = {-1: row >= k, 0: None, 1: row < hh - k}
        col_ok = {-1: col >= k, 0: None, 1: col < ww - k}
        s = jnp.zeros((cd, P), jnp.float32)
        for dy in (-1, 0, 1):
            for dx in (-1, 0, 1):
                tap = 3 * (dy + 1) + (dx + 1)
                shifted = _shift_flat(field, (dy * ww + dx) * k, P)
                rm, cm = row_ok[dy], col_ok[dx]
                m = rm if cm is None else (cm if rm is None else rm & cm)
                if m is not None:
                    shifted = jnp.where(m, shifted, 0.0)
                s = s + dww_ref[lvl, tap] * shifted
        s_parts.append(s)    # per-level dw bias folded into bias_ref (host side)

    # aggr 1x1 conv over the concatenated chunks: one lane-dense (C, P) MXU
    # matmul with K = C instead of n_levels skinny K = C/4 matmuls.
    # TODO(synk): cast MXU operands to bf16 (f32 accum) once tiles are large
    # enough to be MXU-bound; kept f32 here for exact parity with PyTorch.
    s_cat = jnp.concatenate(s_parts, axis=0)            # (C, P)
    out = jnp.dot(agw_ref[...], s_cat,
                  preferred_element_type=jnp.float32) + bias_ref[...]
    o_ref[0] = _gelu(out) * x


# ------------------------------ forward wrapper -------------------------------

def safm_forward(x_nchw, params, n_levels=N_LEVELS):
    B, C, H, W = x_nchw.shape
    assert C % n_levels == 0, "dim must be divisible by n_levels"
    cd = C // n_levels
    kmax = 1 << (n_levels - 1)
    # TODO(synk): torch adaptive_max_pool2d also handles H, W not divisible by
    # 2**(n_levels-1); this kernel assumes exact (non-overlapping) pooling.
    assert H % kmax == 0 and W % kmax == 0
    # TODO(synk): for SR-sized inputs (H*W*C >> VMEM, esp. v7x 64MiB) add a
    # spatial-tile grid axis with a kmax halo on the taps.
    P = H * W

    x = x_nchw.reshape(B, C, P).astype(jnp.float32)   # NCHW is channel-major: free reshape
    idx = jnp.arange(P, dtype=jnp.int32)
    row = (idx // W).reshape(1, P)
    col = (idx % W).reshape(1, P)

    # Fold the per-level depthwise biases into the aggregation bias (exact):
    #   aggr(cat(conv_i(f_i) + b_i)) == aggr(cat(conv_i(f_i))) + W_aggr @ cat(b_i) + b_aggr
    aggr_w = params['aggr_w'].astype(jnp.float32)                # (C, C)
    dwb_flat = params['dw_b'].astype(jnp.float32).reshape(C)     # level-major == cat order
    fused_b = (params['aggr_b'].astype(jnp.float32)
               + (aggr_w * dwb_flat[None, :]).sum(axis=1)).reshape(C, 1)

    kern = functools.partial(_safm_kernel, hh=H, ww=W, cd=cd, n_levels=n_levels)

    def full(shape):
        n = len(shape)
        return pl.BlockSpec(shape, lambda b, n=n: (0,) * n)

    out = pl.pallas_call(
        kern,
        grid=(B,),
        in_specs=[
            pl.BlockSpec((1, C, P), lambda b: (b, 0, 0)),   # x, channel-major
            full((1, P)), full((1, P)),                     # row / col ids
            full((n_levels, 9, cd, 1)),                     # depthwise weights
            full((C, C)),                                   # aggr 1x1 weight
            full((C, 1)),                                   # fused bias
        ],
        out_specs=pl.BlockSpec((1, C, P), lambda b: (b, 0, 0)),
        out_shape=jax.ShapeDtypeStruct((B, C, P), jnp.float32),
        compiler_params=pltpu.CompilerParams(
            dimension_semantics=("parallel",)),   # batch steps independent (2 TCs on v7x)
    )(x, row, col, params['dw_w'].astype(jnp.float32), aggr_w, fused_b)
    return out.reshape(B, C, H, W)


# --------------------------- pure-JAX reference --------------------------------

def safm_reference(x, params, n_levels=N_LEVELS):
    """Plain-JAX mirror of the PyTorch module (self-check only)."""
    B, C, H, W = x.shape
    cd = C // n_levels
    dw_w, dw_b = params['dw_w'], params['dw_b']
    aggr_w, aggr_b = params['aggr_w'], params['aggr_b']

    def dwconv3x3(v, w9, b):                       # v: (B,cd,h,w); w9: (9,cd,1)
        vp = jnp.pad(v, ((0, 0), (0, 0), (1, 1), (1, 1)))
        h, w = v.shape[2], v.shape[3]
        out = jnp.zeros_like(v)
        for i in range(3):
            for j in range(3):
                out = out + (w9[3 * i + j, :, 0][None, :, None, None]
                             * vp[:, :, i:i + h, j:j + w])
        return out + b[None, :, None, None]

    outs = []
    for lvl in range(n_levels):
        k = 1 << lvl
        xc = x[:, lvl * cd:(lvl + 1) * cd]
        if lvl > 0:
            s = xc.reshape(B, cd, H // k, k, W // k, k).max(axis=(3, 5))
            s = dwconv3x3(s, dw_w[lvl], dw_b[lvl])
            s = jnp.repeat(jnp.repeat(s, k, axis=2), k, axis=3)
        else:
            s = dwconv3x3(xc, dw_w[lvl], dw_b[lvl])
        outs.append(s)
    cat = jnp.concatenate(outs, axis=1)
    agg = jnp.einsum('oc,bchw->bohw', aggr_w, cat,
                     precision=jax.lax.Precision.HIGHEST) \
        + aggr_b[None, :, None, None]
    return jax.nn.gelu(agg, approximate=False) * x


# ------------------------------ parameter init --------------------------------

def init_params(key, dim, n_levels=N_LEVELS):
    cd = dim // n_levels
    ks = jax.random.split(key, 4)

    def nrm(k, shape, scale=0.1):
        return (scale * jax.random.normal(k, shape)).astype(jnp.float32)

    return dict(
        # depthwise 3x3 per level; tap index t = 3*(dy+1) + (dx+1).
        # torch mfr[i].weight (cd,1,3,3) maps via .permute(2,3,0,1).reshape(9,cd)[...,None]
        dw_w=nrm(ks[0], (n_levels, 9, cd, 1)),
        # torch mfr[i].bias (cd,)
        dw_b=nrm(ks[1], (n_levels, cd), 0.05),
        # torch aggr.weight (dim,dim,1,1)[:, :, 0, 0]
        aggr_w=nrm(ks[2], (dim, dim)),
        # torch aggr.bias (dim,)
        aggr_b=nrm(ks[3], (dim,), 0.05),
    )


if __name__ == "__main__":
    B, C, H, W = 2, 32, 16, 16        # dim divisible by n_levels=4; H, W by 8
    key = jax.random.PRNGKey(0)
    kx, kp = jax.random.split(key)
    x = jax.random.normal(kx, (B, C, H, W), dtype=jnp.float32)
    params = init_params(kp, C)

    out = jax.jit(safm_forward)(x, params)
    out = jax.block_until_ready(out)
    assert out.shape == (B, C, H, W) and out.dtype == jnp.float32

    ref = jax.block_until_ready(jax.jit(safm_reference)(x, params))
    max_err = float(jnp.max(jnp.abs(out - ref)))
    assert jnp.allclose(out, ref, rtol=2e-3, atol=2e-3), f"max_err={max_err}"
    print("KERNEL_OK")
</pallas_src>

<mosaic_0001>
module attributes {stable_mosaic.version = 11 : i64} {
  func.func @_safm_kernel(%arg0: i32, %arg1: memref<1x32x256xf32, #tpu.memory_space<vmem>>, %arg2: memref<1x256xi32, #tpu.memory_space<vmem>>, %arg3: memref<1x256xi32, #tpu.memory_space<vmem>>, %arg4: memref<4x9x8x1xf32, #tpu.memory_space<vmem>>, %arg5: memref<32x32xf32, #tpu.memory_space<vmem>>, %arg6: memref<32x1xf32, #tpu.memory_space<vmem>>, %arg7: memref<1x32x256xf32, #tpu.memory_space<vmem>>) attributes {dimension_semantics = [#tpu.dimension_semantics<parallel>], iteration_bounds = array<i64: 2>, scalar_prefetch = 0 : i64, scratch_operands = 0 : i64, tpu.core_type = #tpu.core_type<tc>, window_params = [{transform_indices = @transform_0, window_bounds = array<i64: 1, 32, 256>}, {pipeline_mode = #tpu.pipeline_mode<synchronous>, transform_indices = @transform_1, window_bounds = array<i64: 1, 256>}, {pipeline_mode = #tpu.pipeline_mode<synchronous>, transform_indices = @transform_2, window_bounds = array<i64: 1, 256>}, {pipeline_mode = #tpu.pipeline_mode<synchronous>, transform_indices = @transform_3, window_bounds = array<i64: 4, 9, 8, 1>}, {pipeline_mode = #tpu.pipeline_mode<synchronous>, transform_indices = @transform_4, window_bounds = array<i64: 32, 32>}, {pipeline_mode = #tpu.pipeline_mode<synchronous>, transform_indices = @transform_5, window_bounds = array<i64: 32, 1>}, {transform_indices = @transform_6, window_bounds = array<i64: 1, 32, 256>}]} {
    %c0 = arith.constant 0 : index
    %c0_0 = arith.constant 0 : index
    %c0_1 = arith.constant 0 : index
    %0 = vector.load %arg1[%c0, %c0_0, %c0_1] : memref<1x32x256xf32, #tpu.memory_space<vmem>>, vector<1x32x256xf32>
    %1 = vector.shape_cast %0 : vector<1x32x256xf32> to vector<32x256xf32>
    %c0_2 = arith.constant 0 : index
    %c0_3 = arith.constant 0 : index
    %2 = vector.load %arg2[%c0_2, %c0_3] : memref<1x256xi32, #tpu.memory_space<vmem>>, vector<1x256xi32>
    %c0_4 = arith.constant 0 : index
    %c0_5 = arith.constant 0 : index
    %3 = vector.load %arg3[%c0_4, %c0_5] : memref<1x256xi32, #tpu.memory_space<vmem>>, vector<1x256xi32>
    %c1_i32 = arith.constant 1 : i32
    %4 = vector.broadcast %c1_i32 : i32 to vector<1x256xi32>
    %5 = arith.andi %3, %4 : vector<1x256xi32>
    %c0_i32 = arith.constant 0 : i32
    %6 = vector.broadcast %c0_i32 : i32 to vector<1x256xi32>
    %7 = arith.cmpi eq, %5, %6 : vector<1x256xi32>
    %c2_i32 = arith.constant 2 : i32
    %8 = vector.broadcast %c2_i32 : i32 to vector<1x256xi32>
    %9 = arith.andi %3, %8 : vector<1x256xi32>
    %c0_i32_6 = arith.constant 0 : i32
    %10 = vector.broadcast %c0_i32_6 : i32 to vector<1x256xi32>
    %11 = arith.cmpi eq, %9, %10 : vector<1x256xi32>
    %c4_i32 = arith.constant 4 : i32
    %12 = vector.broadcast %c4_i32 : i32 to vector<1x256xi32>
    %13 = arith.andi %3, %12 : vector<1x256xi32>
    %c0_i32_7 = arith.constant 0 : i32
    %14 = vector.broadcast %c0_i32_7 : i32 to vector<1x256xi32>
    %15 = arith.cmpi eq, %13, %14 : vector<1x256xi32>
    %c1_i32_8 = arith.constant 1 : i32
    %16 = vector.broadcast %c1_i32_8 : i32 to vector<1x256xi32>
    %17 = arith.andi %2, %16 : vector<1x256xi32>
    %c0_i32_9 = arith.constant 0 : i32
    %18 = vector.broadcast %c0_i32_9 : i32 to vector<1x256xi32>
    %19 = arith.cmpi eq, %17, %18 : vector<1x256xi32>
    %c2_i32_10 = arith.constant 2 : i32
    %20 = vector.broadcast %c2_i32_10 : i32 to vector<1x256xi32>
    %21 = arith.andi %2, %20 : vector<1x256xi32>
    %c0_i32_11 = arith.constant 0 : i32
    %22 = vector.broadcast %c0_i32_11 : i32 to vector<1x256xi32>
    %23 = arith.cmpi eq, %21, %22 : vector<1x256xi32>
    %c4_i32_12 = arith.constant 4 : i32
    %24 = vector.broadcast %c4_i32_12 : i32 to vector<1x256xi32>
    %25 = arith.andi %2, %24 : vector<1x256xi32>
    %c0_i32_13 = arith.constant 0 : i32
    %26 = vector.broadcast %c0_i32_13 : i32 to vector<1x256xi32>
    %27 = arith.cmpi eq, %25, %26 : vector<1x256xi32>
    %28 = vector.extract_strided_slice %1 {offsets = [0, 0], sizes = [8, 256], strides = [1, 1]} : vector<32x256xf32> to vector<8x256xf32>
    %c1_i32_14 = arith.constant 1 : i32
    %29 = vector.broadcast %c1_i32_14 : i32 to vector<1x256xi32>
    %30 = arith.cmpi sge, %2, %29 : vector<1x256xi32>
    %c15_i32 = arith.constant 15 : i32
    %31 = vector.broadcast %c15_i32 : i32 to vector<1x256xi32>
    %32 = arith.cmpi slt, %2, %31 : vector<1x256xi32>
    %c1_i32_15 = arith.constant 1 : i32
    %33 = vector.broadcast %c1_i32_15 : i32 to vector<1x256xi32>
    %34 = arith.cmpi sge, %3, %33 : vector<1x256xi32>
    %c15_i32_16 = arith.constant 15 : i32
    %35 = vector.broadcast %c15_i32_16 : i32 to vector<1x256xi32>
    %36 = arith.cmpi slt, %3, %35 : vector<1x256xi32>
    %cst = arith.constant 0.000000e+00 : f32
    %37 = vector.broadcast %cst : f32 to vector<8x256xf32>
    %c17_i32 = arith.constant 17 : i32
    %38 = tpu.dynamic_rotate %28 by %c17_i32 dim 1 : vector<8x256xf32>, i32 -> vector<8x256xf32>
    %39 = arith.andi %30, %34 : vector<1x256xi1>
    %cst_17 = arith.constant 0.000000e+00 : f32
    %40 = vector.shape_cast %39 : vector<1x256xi1> to vector<1x256xi1>
    %41 = vector.broadcast %40 : vector<1x256xi1> to vector<8x256xi1>
    %42 = vector.broadcast %cst_17 : f32 to vector<8x256xf32>
    %43 = arith.select %41, %38, %42 : vector<8x256xi1>, vector<8x256xf32>
    %c0_18 = arith.constant 0 : index
    %c0_19 = arith.constant 0 : index
    %c0_20 = arith.constant 0 : index
    %c0_21 = arith.constant 0 : index
    %44 = vector.load %arg4[%c0_18, %c0_19, %c0_20, %c0_21] : memref<4x9x8x1xf32, #tpu.memory_space<vmem>>, vector<1x1x8x1xf32>
    %45 = vector.shape_cast %44 : vector<1x1x8x1xf32> to vector<8x1xf32>
    %46 = vector.broadcast %45 : vector<8x1xf32> to vector<8x256xf32>
    %47 = arith.mulf %46, %43 : vector<8x256xf32>
    %48 = arith.addf %37, %47 : vector<8x256xf32>
    %c16_i32 = arith.constant 16 : i32
    %49 = tpu.dynamic_rotate %28 by %c16_i32 dim 1 : vector<8x256xf32>, i32 -> vector<8x256xf32>
    %cst_22 = arith.constant 0.000000e+00 : f32
    %50 = vector.shape_cast %30 : vector<1x256xi1> to vector<1x256xi1>
    %51 = vector.broadcast %50 : vector<1x256xi1> to vector<8x256xi1>
    %52 = vector.broadcast %cst_22 : f32 to vector<8x256xf32>
    %53 = arith.select %51, %49, %52 : vector<8x256xi1>, vector<8x256xf32>
    %c0_23 = arith.constant 0 : index
    %c1 = arith.constant 1 : index
    %c0_24 = arith.constant 0 : index
    %c0_25 = arith.constant 0 : index
    %54 = vector.load %arg4[%c0_23, %c1, %c0_24, %c0_25] : memref<4x9x8x1xf32, #tpu.memory_space<vmem>>, vector<1x1x8x1xf32>
    %55 = vector.shape_cast %54 : vector<1x1x8x1xf32> to vector<8x1xf32>
    %56 = vector.broadcast %55 : vector<8x1xf32> to vector<8x256xf32>
    %57 = arith.mulf %56, %53 : vector<8x256xf32>
    %58 = arith.addf %48, %57 : vector<8x256xf32>
    %c15_i32_26 = arith.constant 15 : i32
    %59 = tpu.dynamic_rotate %28 by %c15_i32_26 dim 1 : vector<8x256xf32>, i32 -> vector<8x256xf32>
    %60 = arith.andi %30, %36 : vector<1x256xi1>
    %cst_27 = arith.constant 0.000000e+00 : f32
    %61 = vector.shape_cast %60 : vector<1x256xi1> to vector<1x256xi1>
    %62 = vector.broadcast %61 : vector<1x256xi1> to vector<8x256xi1>
    %63 = vector.broadcast %cst_27 : f32 to vector<8x256xf32>
    %64 = arith.select %62, %59, %63 : vector<8x256xi1>, vector<8x256xf32>
    %c0_28 = arith.constant 0 : index
    %c2 = arith.constant 2 : index
    %c0_29 = arith.constant 0 : index
    %c0_30 = arith.constant 0 : index
    %65 = vector.load %arg4[%c0_28, %c2, %c0_29, %c0_30] : memref<4x9x8x1xf32, #tpu.memory_space<vmem>>, vector<1x1x8x1xf32>
    %66 = vector.shape_cast %65 : vector<1x1x8x1xf32> to vector<8x1xf32>
    %67 = vector.broadcast %66 : vector<8x1xf32> to vector<8x256xf32>
    %68 = arith.mulf %67, %64 : vector<8x256xf32>
    %69 = arith.addf %58, %68 : vector<8x256xf32>
    %c1_i32_31 = arith.constant 1 : i32
    %70 = tpu.dynamic_rotate %28 by %c1_i32_31 dim 1 : vector<8x256xf32>, i32 -> vector<8x256xf32>
    %cst_32 = arith.constant 0.000000e+00 : f32
    %71 = vector.shape_cast %34 : vector<1x256xi1> to vector<1x256xi1>
    %72 = vector.broadcast %71 : vector<1x256xi1> to vector<8x256xi1>
    %73 = vector.broadcast %cst_32 : f32 to vector<8x256xf32>
    %74 = arith.select %72, %70, %73 : vector<8x256xi1>, vector<8x256xf32>
    %c0_33 = arith.constant 0 : index
    %c3 = arith.constant 3 : index
    %c0_34 = arith.constant 0 : index
    %c0_35 = arith.constant 0 : index
    %75 = vector.load %arg4[%c0_33, %c3, %c0_34, %c0_35] : memref<4x9x8x1xf32, #tpu.memory_space<vmem>>, vector<1x1x8x1xf32>
    %76 = vector.shape_cast %75 : vector<1x1x8x1xf32> to vector<8x1xf32>
    %77 = vector.broadcast %76 : vector<8x1xf32> to vector<8x256xf32>
    %78 = arith.mulf %77, %74 : vector<8x256xf32>
    %79 = arith.addf %69, %78 : vector<8x256xf32>
    %c0_36 = arith.constant 0 : index
    %c4 = arith.constant 4 : index
    %c0_37 = arith.constant 0 : index
    %c0_38 = arith.constant 0 : index
    %80 = vector.load %arg4[%c0_36, %c4, %c0_37, %c0_38] : memref<4x9x8x1xf32, #tpu.memory_space<vmem>>, vector<1x1x8x1xf32>
    %81 = vector.shape_cast %80 : vector<1x1x8x1xf32> to vector<8x1xf32>
    %82 = vector.broadcast %81 : vector<8x1xf32> to vector<8x256xf32>
    %83 = arith.mulf %82, %28 : vector<8x256xf32>
    %84 = arith.addf %79, %83 : vector<8x256xf32>
    %c255_i32 = arith.constant 255 : i32
    %85 = tpu.dynamic_rotate %28 by %c255_i32 dim 1 : vector<8x256xf32>, i32 -> vector<8x256xf32>
    %cst_39 = arith.constant 0.000000e+00 : f32
    %86 = vector.shape_cast %36 : vector<1x256xi1> to vector<1x256xi1>
    %87 = vector.broadcast %86 : vector<1x256xi1> to vector<8x256xi1>
    %88 = vector.broadcast %cst_39 : f32 to vector<8x256xf32>
    %89 = arith.select %87, %85, %88 : vector<8x256xi1>, vector<8x256xf32>
    %c0_40 = arith.constant 0 : index
    %c5 = arith.constant 5 : index
    %c0_41 = arith.constant 0 : index
    %c0_42 = arith.constant 0 : index
    %90 = vector.load %arg4[%c0_40, %c5, %c0_41, %c0_42] : memref<4x9x8x1xf32, #tpu.memory_space<vmem>>, vector<1x1x8x1xf32>
    %91 = vector.shape_cast %90 : vector<1x1x8x1xf32> to vector<8x1xf32>
    %92 = vector.broadcast %91 : vector<8x1xf32> to vector<8x256xf32>
    %93 = arith.mulf %92, %89 : vector<8x256xf32>
    %94 = arith.addf %84, %93 : vector<8x256xf32>
    %c241_i32 = arith.constant 241 : i32
    %95 = tpu.dynamic_rotate %28 by %c241_i32 dim 1 : vector<8x256xf32>, i32 -> vector<8x256xf32>
    %96 = arith.andi %32, %34 : vector<1x256xi1>
    %cst_43 = arith.constant 0.000000e+00 : f32
    %97 = vector.shape_cast %96 : vector<1x256xi1> to vector<1x256xi1>
    %98 = vector.broadcast %97 : vector<1x256xi1> to vector<8x256xi1>
    %99 = vector.broadcast %cst_43 : f32 to vector<8x256xf32>
    %100 = arith.select %98, %95, %99 : vector<8x256xi1>, vector<8x256xf32>
    %c0_44 = arith.constant 0 : index
    %c6 = arith.constant 6 : index
    %c0_45 = arith.constant 0 : index
    %c0_46 = arith.constant 0 : index
    %101 = vector.load %arg4[%c0_44, %c6, %c0_45, %c0_46] : memref<4x9x8x1xf32, #tpu.memory_space<vmem>>, vector<1x1x8x1xf32>
    %102 = vector.shape_cast %101 : vector<1x1x8x1xf32> to vector<8x1xf32>
    %103 = vector.broadcast %102 : vector<8x1xf32> to vector<8x256xf32>
    %104 = arith.mulf %103, %100 : vector<8x256xf32>
    %105 = arith.addf %94, %104 : vector<8x256xf32>
    %c240_i32 = arith.constant 240 : i32
    %106 = tpu.dynamic_rotate %28 by %c240_i32 dim 1 : vector<8x256xf32>, i32 -> vector<8x256xf32>
    %cst_47 = arith.constant 0.000000e+00 : f32
    %107 = vector.shape_cast %32 : vector<1x256xi1> to vector<1x256xi1>
    %108 = vector.broadcast %107 : vector<1x256xi1> to vector<8x256xi1>
    %109 = vector.broadcast %cst_47 : f32 to vector<8x256xf32>
    %110 = arith.select %108, %106, %109 : vector<8x256xi1>, vector<8x256xf32>
    %c0_48 = arith.constant 0 : index
    %c7 = arith.constant 7 : index
    %c0_49 = arith.constant 0 : index
    %c0_50 = arith.constant 0 : index
    %111 = vector.load %arg4[%c0_48, %c7, %c0_49, %c0_50] : memref<4x9x8x1xf32, #tpu.memory_space<vmem>>, vector<1x1x8x1xf32>
    %112 = vector.shape_cast %111 : vector<1x1x8x1xf32> to vector<8x1xf32>
    %113 = vector.broadcast %112 : vector<8x1xf32> to vector<8x256xf32>
    %114 = arith.mulf %113, %110 : vector<8x256xf32>
    %115 = arith.addf %105, %114 : vector<8x256xf32>
    %c239_i32 = arith.constant 239 : i32
    %116 = tpu.dynamic_rotate %28 by %c239_i32 dim 1 : vector<8x256xf32>, i32 -> vector<8x256xf32>
    %117 = arith.andi %32, %36 : vector<1x256xi1>
    %cst_51 = arith.constant 0.000000e+00 : f32
    %118 = vector.shape_cast %117 : vector<1x256xi1> to vector<1x256xi1>
    %119 = vector.broadcast %118 : vector<1x256xi1> to vector<8x256xi1>
    %120 = vector.broadcast %cst_51 : f32 to vector<8x256xf32>
    %121 = arith.select %119, %116, %120 : vector<8x256xi1>, vector<8x256xf32>
    %c0_52 = arith.constant 0 : index
    %c8 = arith.constant 8 : index
    %c0_53 = arith.constant 0 : index
    %c0_54 = arith.constant 0 : index
    %122 = vector.load %arg4[%c0_52, %c8, %c0_53, %c0_54] : memref<4x9x8x1xf32, #tpu.memory_space<vmem>>, vector<1x1x8x1xf32>
    %123 = vector.shape_cast %122 : vector<1x1x8x1xf32> to vector<8x1xf32>
    %124 = vector.broadcast %123 : vector<8x1xf32> to vector<8x256xf32>
    %125 = arith.mulf %124, %121 : vector<8x256xf32>
    %126 = arith.addf %115, %125 : vector<8x256xf32>
    %127 = vector.extract_strided_slice %1 {offsets = [8, 0], sizes = [8, 256], strides = [1, 1]} : vector<32x256xf32> to vector<8x256xf32>
    %c255_i32_55 = arith.constant 255 : i32
    %128 = tpu.dynamic_rotate %127 by %c255_i32_55 dim 1 : vector<8x256xf32>, i32 -> vector<8x256xf32>
    %c1_i32_56 = arith.constant 1 : i32
    %129 = tpu.dynamic_rotate %127 by %c1_i32_56 dim 1 : vector<8x256xf32>, i32 -> vector<8x256xf32>
    %130 = vector.shape_cast %7 : vector<1x256xi1> to vector<1x256xi1>
    %131 = vector.broadcast %130 : vector<1x256xi1> to vector<8x256xi1>
    %132 = arith.select %131, %128, %129 : vector<8x256xi1>, vector<8x256xf32>
    %133 = arith.maximumf %127, %132 : vector<8x256xf32>
    %c240_i32_57 = arith.constant 240 : i32
    %134 = tpu.dynamic_rotate %133 by %c240_i32_57 dim 1 : vector<8x256xf32>, i32 -> vector<8x256xf32>
    %c16_i32_58 = arith.constant 16 : i32
    %135 = tpu.dynamic_rotate %133 by %c16_i32_58 dim 1 : vector<8x256xf32>, i32 -> vector<8x256xf32>
    %136 = vector.shape_cast %19 : vector<1x256xi1> to vector<1x256xi1>
    %137 = vector.broadcast %136 : vector<1x256xi1> to vector<8x256xi1>
    %138 = arith.select %137, %134, %135 : vector<8x256xi1>, vector<8x256xf32>
    %139 = arith.maximumf %133, %138 : vector<8x256xf32>
    %c2_i32_59 = arith.constant 2 : i32
    %140 = vector.broadcast %c2_i32_59 : i32 to vector<1x256xi32>
    %141 = arith.cmpi sge, %2, %140 : vector<1x256xi32>
    %c14_i32 = arith.constant 14 : i32
    %142 = vector.broadcast %c14_i32 : i32 to vector<1x256xi32>
    %143 = arith.cmpi slt, %2, %142 : vector<1x256xi32>
    %c2_i32_60 = arith.constant 2 : i32
    %144 = vector.broadcast %c2_i32_60 : i32 to vector<1x256xi32>
    %145 = arith.cmpi sge, %3, %144 : vector<1x256xi32>
    %c14_i32_61 = arith.constant 14 : i32
    %146 = vector.broadcast %c14_i32_61 : i32 to vector<1x256xi32>
    %147 = arith.cmpi slt, %3, %146 : vector<1x256xi32>
    %cst_62 = arith.constant 0.000000e+00 : f32
    %148 = vector.broadcast %cst_62 : f32 to vector<8x256xf32>
    %c34_i32 = arith.constant 34 : i32
    %149 = tpu.dynamic_rotate %139 by %c34_i32 dim 1 : vector<8x256xf32>, i32 -> vector<8x256xf32>
    %150 = arith.andi %141, %145 : vector<1x256xi1>
    %cst_63 = arith.constant 0.000000e+00 : f32
    %151 = vector.shape_cast %150 : vector<1x256xi1> to vector<1x256xi1>
    %152 = vector.broadcast %151 : vector<1x256xi1> to vector<8x256xi1>
    %153 = vector.broadcast %cst_63 : f32 to vector<8x256xf32>
    %154 = arith.select %152, %149, %153 : vector<8x256xi1>, vector<8x256xf32>
    %c1_64 = arith.constant 1 : index
    %c0_65 = arith.constant 0 : index
    %c0_66 = arith.constant 0 : index
    %c0_67 = arith.constant 0 : index
    %155 = vector.load %arg4[%c1_64, %c0_65, %c0_66, %c0_67] : memref<4x9x8x1xf32, #tpu.memory_space<vmem>>, vector<1x1x8x1xf32>
    %156 = vector.shape_cast %155 : vector<1x1x8x1xf32> to vector<8x1xf32>
    %157 = vector.broadcast %156 : vector<8x1xf32> to vector<8x256xf32>
    %158 = arith.mulf %157, %154 : vector<8x256xf32>
    %159 = arith.addf %148, %158 : vector<8x256xf32>
    %c32_i32 = arith.constant 32 : i32
    %160 = tpu.dynamic_rotate %139 by %c32_i32 dim 1 : vector<8x256xf32>, i32 -> vector<8x256xf32>
    %cst_68 = arith.constant 0.000000e+00 : f32
    %161 = vector.shape_cast %141 : vector<1x256xi1> to vector<1x256xi1>
    %162 = vector.broadcast %161 : vector<1x256xi1> to vector<8x256xi1>
    %163 = vector.broadcast %cst_68 : f32 to vector<8x256xf32>
    %164 = arith.select %162, %160, %163 : vector<8x256xi1>, vector<8x256xf32>
    %c1_69 = arith.constant 1 : index
    %c1_70 = arith.constant 1 : index
    %c0_71 = arith.constant 0 : index
    %c0_72 = arith.constant 0 : index
    %165 = vector.load %arg4[%c1_69, %c1_70, %c0_71, %c0_72] : memref<4x9x8x1xf32, #tpu.memory_space<vmem>>, vector<1x1x8x1xf32>
    %166 = vector.shape_cast %165 : vector<1x1x8x1xf32> to vector<8x1xf32>
    %167 = vector.broadcast %166 : vector<8x1xf32> to vector<8x256xf32>
    %168 = arith.mulf %167, %164 : vector<8x256xf32>
    %169 = arith.addf %159, %168 : vector<8x256xf32>
    %c30_i32 = arith.constant 30 : i32
    %170 = tpu.dynamic_rotate %139 by %c30_i32 dim 1 : vector<8x256xf32>, i32 -> vector<8x256xf32>
    %171 = arith.andi %141, %147 : vector<1x256xi1>
    %cst_73 = arith.constant 0.000000e+00 : f32
    %172 = vector.shape_cast %171 : vector<1x256xi1> to vector<1x256xi1>
    %173 = vector.broadcast %172 : vector<1x256xi1> to vector<8x256xi1>
    %174 = vector.broadcast %cst_73 : f32 to vector<8x256xf32>
    %175 = arith.select %173, %170, %174 : vector<8x256xi1>, vector<8x256xf32>
    %c1_74 = arith.constant 1 : index
    %c2_75 = arith.constant 2 : index
    %c0_76 = arith.constant 0 : index
    %c0_77 = arith.constant 0 : index
    %176 = vector.load %arg4[%c1_74, %c2_75, %c0_76, %c0_77] : memref<4x9x8x1xf32, #tpu.memory_space<vmem>>, vector<1x1x8x1xf32>
    %177 = vector.shape_cast %176 : vector<1x1x8x1xf32> to vector<8x1xf32>
    %178 = vector.broadcast %177 : vector<8x1xf32> to vector<8x256xf32>
    %179 = arith.mulf %178, %175 : vector<8x256xf32>
    %180 = arith.addf %169, %179 : vector<8x256xf32>
    %c2_i32_78 = arith.constant 2 : i32
    %181 = tpu.dynamic_rotate %139 by %c2_i32_78 dim 1 : vector<8x256xf32>, i32 -> vector<8x256xf32>
    %cst_79 = arith.constant 0.000000e+00 : f32
    %182 = vector.shape_cast %145 : vector<1x256xi1> to vector<1x256xi1>
    %183 = vector.broadcast %182 : vector<1x256xi1> to vector<8x256xi1>
    %184 = vector.broadcast %cst_79 : f32 to vector<8x256xf32>
    %185 = arith.select %183, %181, %184 : vector<8x256xi1>, vector<8x256xf32>
    %c1_80 = arith.constant 1 : index
    %c3_81 = arith.constant 3 : index
    %c0_82 = arith.constant 0 : index
    %c0_83 = arith.constant 0 : index
    %186 = vector.load %arg4[%c1_80, %c3_81, %c0_82, %c0_83] : memref<4x9x8x1xf32, #tpu.memory_space<vmem>>, vector<1x1x8x1xf32>
    %187 = vector.shape_cast %186 : vector<1x1x8x1xf32> to vector<8x1xf32>
    %188 = vector.broadcast %187 : vector<8x1xf32> to vector<8x256xf32>
    %189 = arith.mulf %188, %185 : vector<8x256xf32>
    %190 = arith.addf %180, %189 : vector<8x256xf32>
    %c1_84 = arith.constant 1 : index
    %c4_85 = arith.constant 4 : index
    %c0_86 = arith.constant 0 : index
    %c0_87 = arith.constant 0 : index
    %191 = vector.load %arg4[%c1_84, %c4_85, %c0_86, %c0_87] : memref<4x9x8x1xf32, #tpu.memory_space<vmem>>, vector<1x1x8x1xf32>
    %192 = vector.shape_cast %191 : vector<1x1x8x1xf32> to vector<8x1xf32>
    %193 = vector.broadcast %192 : vector<8x1xf32> to vector<8x256xf32>
    %194 = arith.mulf %193, %139 : vector<8x256xf32>
    %195 = arith.addf %190, %194 : vector<8x256xf32>
    %c254_i32 = arith.constant 254 : i32
    %196 = tpu.dynamic_rotate %139 by %c254_i32 dim 1 : vector<8x256xf32>, i32 -> vector<8x256xf32>
    %cst_88 = arith.constant 0.000000e+00 : f32
    %197 = vector.shape_cast %147 : vector<1x256xi1> to vector<1x256xi1>
    %198 = vector.broadcast %197 : vector<1x256xi1> to vector<8x256xi1>
    %199 = vector.broadcast %cst_88 : f32 to vector<8x256xf32>
    %200 = arith.select %198, %196, %199 : vector<8x256xi1>, vector<8x256xf32>
    %c1_89 = arith.constant 1 : index
    %c5_90 = arith.constant 5 : index
    %c0_91 = arith.constant 0 : index
    %c0_92 = arith.constant 0 : index
    %201 = vector.load %arg4[%c1_89, %c5_90, %c0_91, %c0_92] : memref<4x9x8x1xf32, #tpu.memory_space<vmem>>, vector<1x1x8x1xf32>
    %202 = vector.shape_cast %201 : vector<1x1x8x1xf32> to vector<8x1xf32>
    %203 = vector.broadcast %202 : vector<8x1xf32> to vector<8x256xf32>
    %204 = arith.mulf %203, %200 : vector<8x256xf32>
    %205 = arith.addf %195, %204 : vector<8x256xf32>
    %c226_i32 = arith.constant 226 : i32
    %206 = tpu.dynamic_rotate %139 by %c226_i32 dim 1 : vector<8x256xf32>, i32 -> vector<8x256xf32>
    %207 = arith.andi %143, %145 : vector<1x256xi1>
    %cst_93 = arith.constant 0.000000e+00 : f32
    %208 = vector.shape_cast %207 : vector<1x256xi1> to vector<1x256xi1>
    %209 = vector.broadcast %208 : vector<1x256xi1> to vector<8x256xi1>
    %210 = vector.broadcast %cst_93 : f32 to vector<8x256xf32>
    %211 = arith.select %209, %206, %210 : vector<8x256xi1>, vector<8x256xf32>
    %c1_94 = arith.constant 1 : index
    %c6_95 = arith.constant 6 : index
    %c0_96 = arith.constant 0 : index
    %c0_97 = arith.constant 0 : index
    %212 = vector.load %arg4[%c1_94, %c6_95, %c0_96, %c0_97] : memref<4x9x8x1xf32, #tpu.memory_space<vmem>>, vector<1x1x8x1xf32>
    %213 = vector.shape_cast %212 : vector<1x1x8x1xf32> to vector<8x1xf32>
    %214 = vector.broadcast %213 : vector<8x1xf32> to vector<8x256xf32>
    %215 = arith.mulf %214, %211 : vector<8x256xf32>
    %216 = arith.addf %205, %215 : vector<8x256xf32>
    %c224_i32 = arith.constant 224 : i32
    %217 = tpu.dynamic_rotate %139 by %c224_i32 dim 1 : vector<8x256xf32>, i32 -> vector<8x256xf32>
    %cst_98 = arith.constant 0.000000e+00 : f32
    %218 = vector.shape_cast %143 : vector<1x256xi1> to vector<1x256xi1>
    %219 = vector.broadcast %218 : vector<1x256xi1> to vector<8x256xi1>
    %220 = vector.broadcast %cst_98 : f32 to vector<8x256xf32>
    %221 = arith.select %219, %217, %220 : vector<8x256xi1>, vector<8x256xf32>
    %c1_99 = arith.constant 1 : index
    %c7_100 = arith.constant 7 : index
    %c0_101 = arith.constant 0 : index
    %c0_102 = arith.constant 0 : index
    %222 = vector.load %arg4[%c1_99, %c7_100, %c0_101, %c0_102] : memref<4x9x8x1xf32, #tpu.memory_space<vmem>>, vector<1x1x8x1xf32>
    %223 = vector.shape_cast %222 : vector<1x1x8x1xf32> to vector<8x1xf32>
    %224 = vector.broadcast %223 : vector<8x1xf32> to vector<8x256xf32>
    %225 = arith.mulf %224, %221 : vector<8x256xf32>
    %226 = arith.addf %216, %225 : vector<8x256xf32>
    %c222_i32 = arith.constant 222 : i32
    %227 = tpu.dynamic_rotate %139 by %c222_i32 dim 1 : vector<8x256xf32>, i32 -> vector<8x256xf32>
    %228 = arith.andi %143, %147 : vector<1x256xi1>
    %cst_103 = arith.constant 0.000000e+00 : f32
    %229 = vector.shape_cast %228 : vector<1x256xi1> to vector<1x256xi1>
    %230 = vector.broadcast %229 : vector<1x256xi1> to vector<8x256xi1>
    %231 = vector.broadcast %cst_103 : f32 to vector<8x256xf32>
    %232 = arith.select %230, %227, %231 : vector<8x256xi1>, vector<8x256xf32>
    %c1_104 = arith.constant 1 : index
    %c8_105 = arith.constant 8 : index
    %c0_106 = arith.constant 0 : index
    %c0_107 = arith.constant 0 : index
    %233 = vector.load %arg4[%c1_104, %c8_105, %c0_106, %c0_107] : memref<4x9x8x1xf32, #tpu.memory_space<vmem>>, vector<1x1x8x1xf32>
    %234 = vector.shape_cast %233 : vector<1x1x8x1xf32> to vector<8x1xf32>
    %235 = vector.broadcast %234 : vector<8x1xf32> to vector<8x256xf32>
    %236 = arith.mulf %235, %232 : vector<8x256xf32>
    %237 = arith.addf %226, %236 : vector<8x256xf32>
    %238 = vector.extract_strided_slice %1 {offsets = [16, 0], sizes = [8, 256], strides = [1, 1]} : vector<32x256xf32> to vector<8x256xf32>
    %c255_i32_108 = arith.constant 255 : i32
    %239 = tpu.dynamic_rotate %238 by %c255_i32_108 dim 1 : vector<8x256xf32>, i32 -> vector<8x256xf32>
    %c1_i32_109 = arith.constant 1 : i32
    %240 = tpu.dynamic_rotate %238 by %c1_i32_109 dim 1 : vector<8x256xf32>, i32 -> vector<8x256xf32>
    %241 = vector.shape_cast %7 : vector<1x256xi1> to vector<1x256xi1>
    %242 = vector.broadcast %241 : vector<1x256xi1> to vector<8x256xi1>
    %243 = arith.select %242, %239, %240 : vector<8x256xi1>, vector<8x256xf32>
    %244 = arith.maximumf %238, %243 : vector<8x256xf32>
    %c254_i32_110 = arith.constant 254 : i32
    %245 = tpu.dynamic_rotate %244 by %c254_i32_110 dim 1 : vector<8x256xf32>, i32 -> vector<8x256xf32>
    %c2_i32_111 = arith.constant 2 : i32
    %246 = tpu.dynamic_rotate %244 by %c2_i32_111 dim 1 : vector<8x256xf32>, i32 -> vector<8x256xf32>
    %247 = vector.shape_cast %11 : vector<1x256xi1> to vector<1x256xi1>
    %248 = vector.broadcast %247 : vector<1x256xi1> to vector<8x256xi1>
    %249 = arith.select %248, %245, %246 : vector<8x256xi1>, vector<8x256xf32>
    %250 = arith.maximumf %244, %249 : vector<8x256xf32>
    %c240_i32_112 = arith.constant 240 : i32
    %251 = tpu.dynamic_rotate %250 by %c240_i32_112 dim 1 : vector<8x256xf32>, i32 -> vector<8x256xf32>
    %c16_i32_113 = arith.constant 16 : i32
    %252 = tpu.dynamic_rotate %250 by %c16_i32_113 dim 1 : vector<8x256xf32>, i32 -> vector<8x256xf32>
    %253 = vector.shape_cast %19 : vector<1x256xi1> to vector<1x256xi1>
    %254 = vector.broadcast %253 : vector<1x256xi1> to vector<8x256xi1>
    %255 = arith.select %254, %251, %252 : vector<8x256xi1>, vector<8x256xf32>
    %256 = arith.maximumf %250, %255 : vector<8x256xf32>
    %c224_i32_114 = arith.constant 224 : i32
    %257 = tpu.dynamic_rotate %256 by %c224_i32_114 dim 1 : vector<8x256xf32>, i32 -> vector<8x256xf32>
    %c32_i32_115 = arith.constant 32 : i32
    %258 = tpu.dynamic_rotate %256 by %c32_i32_115 dim 1 : vector<8x256xf32>, i32 -> vector<8x256xf32>
    %259 = vector.shape_cast %23 : vector<1x256xi1> to vector<1x256xi1>
    %260 = vector.broadcast %259 : vector<1x256xi1> to vector<8x256xi1>
    %261 = arith.select %260, %257, %258 : vector<8x256xi1>, vector<8x256xf32>
    %262 = arith.maximumf %256, %261 : vector<8x256xf32>
    %c4_i32_116 = arith.constant 4 : i32
    %263 = vector.broadcast %c4_i32_116 : i32 to vector<1x256xi32>
    %264 = arith.cmpi sge, %2, %263 : vector<1x256xi32>
    %c12_i32 = arith.constant 12 : i32
    %265 = vector.broadcast %c12_i32 : i32 to vector<1x256xi32>
    %266 = arith.cmpi slt, %2, %265 : vector<1x256xi32>
    %c4_i32_117 = arith.constant 4 : i32
    %267 = vector.broadcast %c4_i32_117 : i32 to vector<1x256xi32>
    %268 = arith.cmpi sge, %3, %267 : vector<1x256xi32>
    %c12_i32_118 = arith.constant 12 : i32
    %269 = vector.broadcast %c12_i32_118 : i32 to vector<1x256xi32>
    %270 = arith.cmpi slt, %3, %269 : vector<1x256xi32>
    %cst_119 = arith.constant 0.000000e+00 : f32
    %271 = vector.broadcast %cst_119 : f32 to vector<8x256xf32>
    %c68_i32 = arith.constant 68 : i32
    %272 = tpu.dynamic_rotate %262 by %c68_i32 dim 1 : vector<8x256xf32>, i32 -> vector<8x256xf32>
    %273 = arith.andi %264, %268 : vector<1x256xi1>
    %cst_120 = arith.constant 0.000000e+00 : f32
    %274 = vector.shape_cast %273 : vector<1x256xi1> to vector<1x256xi1>
    %275 = vector.broadcast %274 : vector<1x256xi1> to vector<8x256xi1>
    %276 = vector.broadcast %cst_120 : f32 to vector<8x256xf32>
    %277 = arith.select %275, %272, %276 : vector<8x256xi1>, vector<8x256xf32>
    %c2_121 = arith.constant 2 : index
    %c0_122 = arith.constant 0 : index
    %c0_123 = arith.constant 0 : index
    %c0_124 = arith.constant 0 : index
    %278 = vector.load %arg4[%c2_121, %c0_122, %c0_123, %c0_124] : memref<4x9x8x1xf32, #tpu.memory_space<vmem>>, vector<1x1x8x1xf32>
    %279 = vector.shape_cast %278 : vector<1x1x8x1xf32> to vector<8x1xf32>
    %280 = vector.broadcast %279 : vector<8x1xf32> to vector<8x256xf32>
    %281 = arith.mulf %280, %277 : vector<8x256xf32>
    %282 = arith.addf %271, %281 : vector<8x256xf32>
    %c64_i32 = arith.constant 64 : i32
    %283 = tpu.dynamic_rotate %262 by %c64_i32 dim 1 : vector<8x256xf32>, i32 -> vector<8x256xf32>
    %cst_125 = arith.constant 0.000000e+00 : f32
    %284 = vector.shape_cast %264 : vector<1x256xi1> to vector<1x256xi1>
    %285 = vector.broadcast %284 : vector<1x256xi1> to vector<8x256xi1>
    %286 = vector.broadcast %cst_125 : f32 to vector<8x256xf32>
    %287 = arith.select %285, %283, %286 : vector<8x256xi1>, vector<8x256xf32>
    %c2_126 = arith.constant 2 : index
    %c1_127 = arith.constant 1 : index
    %c0_128 = arith.constant 0 : index
    %c0_129 = arith.constant 0 : index
    %288 = vector.load %arg4[%c2_126, %c1_127, %c0_128, %c0_129] : memref<4x9x8x1xf32, #tpu.memory_space<vmem>>, vector<1x1x8x1xf32>
    %289 = vector.shape_cast %288 : vector<1x1x8x1xf32> to vector<8x1xf32>
    %290 = vector.broadcast %289 : vector<8x1xf32> to vector<8x256xf32>
    %291 = arith.mulf %290, %287 : vector<8x256xf32>
    %292 = arith.addf %282, %291 : vector<8x256xf32>
    %c60_i32 = arith.constant 60 : i32
    %293 = tpu.dynamic_rotate %262 by %c60_i32 dim 1 : vector<8x256xf32>, i32 -> vector<8x256xf32>
    %294 = arith.andi %264, %270 : vector<1x256xi1>
    %cst_130 = arith.constant 0.000000e+00 : f32
    %295 = vector.shape_cast %294 : vector<1x256xi1> to vector<1x256xi1>
    %296 = vector.broadcast %295 : vector<1x256xi1> to vector<8x256xi1>
    %297 = vector.broadcast %cst_130 : f32 to vector<8x256xf32>
    %298 = arith.select %296, %293, %297 : vector<8x256xi1>, vector<8x256xf32>
    %c2_131 = arith.constant 2 : index
    %c2_132 = arith.constant 2 : index
    %c0_133 = arith.constant 0 : index
    %c0_134 = arith.constant 0 : index
    %299 = vector.load %arg4[%c2_131, %c2_132, %c0_133, %c0_134] : memref<4x9x8x1xf32, #tpu.memory_space<vmem>>, vector<1x1x8x1xf32>
    %300 = vector.shape_cast %299 : vector<1x1x8x1xf32> to vector<8x1xf32>
    %301 = vector.broadcast %300 : vector<8x1xf32> to vector<8x256xf32>
    %302 = arith.mulf %301, %298 : vector<8x256xf32>
    %303 = arith.addf %292, %302 : vector<8x256xf32>
    %c4_i32_135 = arith.constant 4 : i32
    %304 = tpu.dynamic_rotate %262 by %c4_i32_135 dim 1 : vector<8x256xf32>, i32 -> vector<8x256xf32>
    %cst_136 = arith.constant 0.000000e+00 : f32
    %305 = vector.shape_cast %268 : vector<1x256xi1> to vector<1x256xi1>
    %306 = vector.broadcast %305 : vector<1x256xi1> to vector<8x256xi1>
    %307 = vector.broadcast %cst_136 : f32 to vector<8x256xf32>
    %308 = arith.select %306, %304, %307 : vector<8x256xi1>, vector<8x256xf32>
    %c2_137 = arith.constant 2 : index
    %c3_138 = arith.constant 3 : index
    %c0_139 = arith.constant 0 : index
    %c0_140 = arith.constant 0 : index
    %309 = vector.load %arg4[%c2_137, %c3_138, %c0_139, %c0_140] : memref<4x9x8x1xf32, #tpu.memory_space<vmem>>, vector<1x1x8x1xf32>
    %310 = vector.shape_cast %309 : vector<1x1x8x1xf32> to vector<8x1xf32>
    %311 = vector.broadcast %310 : vector<8x1xf32> to vector<8x256xf32>
    %312 = arith.mulf %311, %308 : vector<8x256xf32>
    %313 = arith.addf %303, %312 : vector<8x256xf32>
    %c2_141 = arith.constant 2 : index
    %c4_142 = arith.constant 4 : index
    %c0_143 = arith.constant 0 : index
    %c0_144 = arith.constant 0 : index
    %314 = vector.load %arg4[%c2_141, %c4_142, %c0_143, %c0_144] : memref<4x9x8x1xf32, #tpu.memory_space<vmem>>, vector<1x1x8x1xf32>
    %315 = vector.shape_cast %314 : vector<1x1x8x1xf32> to vector<8x1xf32>
    %316 = vector.broadcast %315 : vector<8x1xf32> to vector<8x256xf32>
    %317 = arith.mulf %316, %262 : vector<8x256xf32>
    %318 = arith.addf %313, %317 : vector<8x256xf32>
    %c252_i32 = arith.constant 252 : i32
    %319 = tpu.dynamic_rotate %262 by %c252_i32 dim 1 : vector<8x256xf32>, i32 -> vector<8x256xf32>
    %cst_145 = arith.constant 0.000000e+00 : f32
    %320 = vector.shape_cast %270 : vector<1x256xi1> to vector<1x256xi1>
    %321 = vector.broadcast %320 : vector<1x256xi1> to vector<8x256xi1>
    %322 = vector.broadcast %cst_145 : f32 to vector<8x256xf32>
    %323 = arith.select %321, %319, %322 : vector<8x256xi1>, vector<8x256xf32>
    %c2_146 = arith.constant 2 : index
    %c5_147 = arith.constant 5 : index
    %c0_148 = arith.constant 0 : index
    %c0_149 = arith.constant 0 : index
    %324 = vector.load %arg4[%c2_146, %c5_147, %c0_148, %c0_149] : memref<4x9x8x1xf32, #tpu.memory_space<vmem>>, vector<1x1x8x1xf32>
    %325 = vector.shape_cast %324 : vector<1x1x8x1xf32> to vector<8x1xf32>
    %326 = vector.broadcast %325 : vector<8x1xf32> to vector<8x256xf32>
    %327 = arith.mulf %326, %323 : vector<8x256xf32>
    %328 = arith.addf %318, %327 : vector<8x256xf32>
    %c196_i32 = arith.constant 196 : i32
    %329 = tpu.dynamic_rotate %262 by %c196_i32 dim 1 : vector<8x256xf32>, i32 -> vector<8x256xf32>
    %330 = arith.andi %266, %268 : vector<1x256xi1>
    %cst_150 = arith.constant 0.000000e+00 : f32
    %331 = vector.shape_cast %330 : vector<1x256xi1> to vector<1x256xi1>
    %332 = vector.broadcast %331 : vector<1x256xi1> to vector<8x256xi1>
    %333 = vector.broadcast %cst_150 : f32 to vector<8x256xf32>
    %334 = arith.select %332, %329, %333 : vector<8x256xi1>, vector<8x256xf32>
    %c2_151 = arith.constant 2 : index
    %c6_152 = arith.constant 6 : index
    %c0_153 = arith.constant 0 : index
    %c0_154 = arith.constant 0 : index
    %335 = vector.load %arg4[%c2_151, %c6_152, %c0_153, %c0_154] : memref<4x9x8x1xf32, #tpu.memory_space<vmem>>, vector<1x1x8x1xf32>
    %336 = vector.shape_cast %335 : vector<1x1x8x1xf32> to vector<8x1xf32>
    %337 = vector.broadcast %336 : vector<8x1xf32> to vector<8x256xf32>
    %338 = arith.mulf %337, %334 : vector<8x256xf32>
    %339 = arith.addf %328, %338 : vector<8x256xf32>
    %c192_i32 = arith.constant 192 : i32
    %340 = tpu.dynamic_rotate %262 by %c192_i32 dim 1 : vector<8x256xf32>, i32 -> vector<8x256xf32>
    %cst_155 = arith.constant 0.000000e+00 : f32
    %341 = vector.shape_cast %266 : vector<1x256xi1> to vector<1x256xi1>
    %342 = vector.broadcast %341 : vector<1x256xi1> to vector<8x256xi1>
    %343 = vector.broadcast %cst_155 : f32 to vector<8x256xf32>
    %344 = arith.select %342, %340, %343 : vector<8x256xi1>, vector<8x256xf32>
    %c2_156 = arith.constant 2 : index
    %c7_157 = arith.constant 7 : index
    %c0_158 = arith.constant 0 : index
    %c0_159 = arith.constant 0 : index
    %345 = vector.load %arg4[%c2_156, %c7_157, %c0_158, %c0_159] : memref<4x9x8x1xf32, #tpu.memory_space<vmem>>, vector<1x1x8x1xf32>
    %346 = vector.shape_cast %345 : vector<1x1x8x1xf32> to vector<8x1xf32>
    %347 = vector.broadcast %346 : vector<8x1xf32> to vector<8x256xf32>
    %348 = arith.mulf %347, %344 : vector<8x256xf32>
    %349 = arith.addf %339, %348 : vector<8x256xf32>
    %c188_i32 = arith.constant 188 : i32
    %350 = tpu.dynamic_rotate %262 by %c188_i32 dim 1 : vector<8x256xf32>, i32 -> vector<8x256xf32>
    %351 = arith.andi %266, %270 : vector<1x256xi1>
    %cst_160 = arith.constant 0.000000e+00 : f32
    %352 = vector.shape_cast %351 : vector<1x256xi1> to vector<1x256xi1>
    %353 = vector.broadcast %352 : vector<1x256xi1> to vector<8x256xi1>
    %354 = vector.broadcast %cst_160 : f32 to vector<8x256xf32>
    %355 = arith.select %353, %350, %354 : vector<8x256xi1>, vector<8x256xf32>
    %c2_161 = arith.constant 2 : index
    %c8_162 = arith.constant 8 : index
    %c0_163 = arith.constant 0 : index
    %c0_164 = arith.constant 0 : index
    %356 = vector.load %arg4[%c2_161, %c8_162, %c0_163, %c0_164] : memref<4x9x8x1xf32, #tpu.memory_space<vmem>>, vector<1x1x8x1xf32>
    %357 = vector.shape_cast %356 : vector<1x1x8x1xf32> to vector<8x1xf32>
    %358 = vector.broadcast %357 : vector<8x1xf32> to vector<8x256xf32>
    %359 = arith.mulf %358, %355 : vector<8x256xf32>
    %360 = arith.addf %349, %359 : vector<8x256xf32>
    %361 = vector.extract_strided_slice %1 {offsets = [24, 0], sizes = [8, 256], strides = [1, 1]} : vector<32x256xf32> to vector<8x256xf32>
    %c255_i32_165 = arith.constant 255 : i32
    %362 = tpu.dynamic_rotate %361 by %c255_i32_165 dim 1 : vector<8x256xf32>, i32 -> vector<8x256xf32>
    %c1_i32_166 = arith.constant 1 : i32
    %363 = tpu.dynamic_rotate %361 by %c1_i32_166 dim 1 : vector<8x256xf32>, i32 -> vector<8x256xf32>
    %364 = vector.shape_cast %7 : vector<1x256xi1> to vector<1x256xi1>
    %365 = vector.broadcast %364 : vector<1x256xi1> to vector<8x256xi1>
    %366 = arith.select %365, %362, %363 : vector<8x256xi1>, vector<8x256xf32>
    %367 = arith.maximumf %361, %366 : vector<8x256xf32>
    %c254_i32_167 = arith.constant 254 : i32
    %368 = tpu.dynamic_rotate %367 by %c254_i32_167 dim 1 : vector<8x256xf32>, i32 -> vector<8x256xf32>
    %c2_i32_168 = arith.constant 2 : i32
    %369 = tpu.dynamic_rotate %367 by %c2_i32_168 dim 1 : vector<8x256xf32>, i32 -> vector<8x256xf32>
    %370 = vector.shape_cast %11 : vector<1x256xi1> to vector<1x256xi1>
    %371 = vector.broadcast %370 : vector<1x256xi1> to vector<8x256xi1>
    %372 = arith.select %371, %368, %369 : vector<8x256xi1>, vector<8x256xf32>
    %373 = arith.maximumf %367, %372 : vector<8x256xf32>
    %c252_i32_169 = arith.constant 252 : i32
    %374 = tpu.dynamic_rotate %373 by %c252_i32_169 dim 1 : vector<8x256xf32>, i32 -> vector<8x256xf32>
    %c4_i32_170 = arith.constant 4 : i32
    %375 = tpu.dynamic_rotate %373 by %c4_i32_170 dim 1 : vector<8x256xf32>, i32 -> vector<8x256xf32>
    %376 = vector.shape_cast %15 : vector<1x256xi1> to vector<1x256xi1>
    %377 = vector.broadcast %376 : vector<1x256xi1> to vector<8x256xi1>
    %378 = arith.select %377, %374, %375 : vector<8x256xi1>, vector<8x256xf32>
    %379 = arith.maximumf %373, %378 : vector<8x256xf32>
    %c240_i32_171 = arith.constant 240 : i32
    %380 = tpu.dynamic_rotate %379 by %c240_i32_171 dim 1 : vector<8x256xf32>, i32 -> vector<8x256xf32>
    %c16_i32_172 = arith.constant 16 : i32
    %381 = tpu.dynamic_rotate %379 by %c16_i32_172 dim 1 : vector<8x256xf32>, i32 -> vector<8x256xf32>
    %382 = vector.shape_cast %19 : vector<1x256xi1> to vector<1x256xi1>
    %383 = vector.broadcast %382 : vector<1x256xi1> to vector<8x256xi1>
    %384 = arith.select %383, %380, %381 : vector<8x256xi1>, vector<8x256xf32>
    %385 = arith.maximumf %379, %384 : vector<8x256xf32>
    %c224_i32_173 = arith.constant 224 : i32
    %386 = tpu.dynamic_rotate %385 by %c224_i32_173 dim 1 : vector<8x256xf32>, i32 -> vector<8x256xf32>
    %c32_i32_174 = arith.constant 32 : i32
    %387 = tpu.dynamic_rotate %385 by %c32_i32_174 dim 1 : vector<8x256xf32>, i32 -> vector<8x256xf32>
    %388 = vector.shape_cast %23 : vector<1x256xi1> to vector<1x256xi1>
    %389 = vector.broadcast %388 : vector<1x256xi1> to vector<8x256xi1>
    %390 = arith.select %389, %386, %387 : vector<8x256xi1>, vector<8x256xf32>
    %391 = arith.maximumf %385, %390 : vector<8x256xf32>
    %c192_i32_175 = arith.constant 192 : i32
    %392 = tpu.dynamic_rotate %391 by %c192_i32_175 dim 1 : vector<8x256xf32>, i32 -> vector<8x256xf32>
    %c64_i32_176 = arith.constant 64 : i32
    %393 = tpu.dynamic_rotate %391 by %c64_i32_176 dim 1 : vector<8x256xf32>, i32 -> vector<8x256xf32>
    %394 = vector.shape_cast %27 : vector<1x256xi1> to vector<1x256xi1>
    %395 = vector.broadcast %394 : vector<1x256xi1> to vector<8x256xi1>
    %396 = arith.select %395, %392, %393 : vector<8x256xi1>, vector<8x256xf32>
    %397 = arith.maximumf %391, %396 : vector<8x256xf32>
    %c8_i32 = arith.constant 8 : i32
    %398 = vector.broadcast %c8_i32 : i32 to vector<1x256xi32>
    %399 = arith.cmpi sge, %2, %398 : vector<1x256xi32>
    %c8_i32_177 = arith.constant 8 : i32
    %400 = vector.broadcast %c8_i32_177 : i32 to vector<1x256xi32>
    %401 = arith.cmpi slt, %2, %400 : vector<1x256xi32>
    %c8_i32_178 = arith.constant 8 : i32
    %402 = vector.broadcast %c8_i32_178 : i32 to vector<1x256xi32>
    %403 = arith.cmpi sge, %3, %402 : vector<1x256xi32>
    %c8_i32_179 = arith.constant 8 : i32
    %404 = vector.broadcast %c8_i32_179 : i32 to vector<1x256xi32>
    %405 = arith.cmpi slt, %3, %404 : vector<1x256xi32>
    %cst_180 = arith.constant 0.000000e+00 : f32
    %406 = vector.broadcast %cst_180 : f32 to vector<8x256xf32>
    %c136_i32 = arith.constant 136 : i32
    %407 = tpu.dynamic_rotate %397 by %c136_i32 dim 1 : vector<8x256xf32>, i32 -> vector<8x256xf32>
    %408 = arith.andi %399, %403 : vector<1x256xi1>
    %cst_181 = arith.constant 0.000000e+00 : f32
    %409 = vector.shape_cast %408 : vector<1x256xi1> to vector<1x256xi1>
    %410 = vector.broadcast %409 : vector<1x256xi1> to vector<8x256xi1>
    %411 = vector.broadcast %cst_181 : f32 to vector<8x256xf32>
    %412 = arith.select %410, %407, %411 : vector<8x256xi1>, vector<8x256xf32>
    %c3_182 = arith.constant 3 : index
    %c0_183 = arith.constant 0 : index
    %c0_184 = arith.constant 0 : index
    %c0_185 = arith.constant 0 : index
    %413 = vector.load %arg4[%c3_182, %c0_183, %c0_184, %c0_185] : memref<4x9x8x1xf32, #tpu.memory_space<vmem>>, vector<1x1x8x1xf32>
    %414 = vector.shape_cast %413 : vector<1x1x8x1xf32> to vector<8x1xf32>
    %415 = vector.broadcast %414 : vector<8x1xf32> to vector<8x256xf32>
    %416 = arith.mulf %415, %412 : vector<8x256xf32>
    %417 = arith.addf %406, %416 : vector<8x256xf32>
    %c128_i32 = arith.constant 128 : i32
    %418 = tpu.dynamic_rotate %397 by %c128_i32 dim 1 : vector<8x256xf32>, i32 -> vector<8x256xf32>
    %cst_186 = arith.constant 0.000000e+00 : f32
    %419 = vector.shape_cast %399 : vector<1x256xi1> to vector<1x256xi1>
    %420 = vector.broadcast %419 : vector<1x256xi1> to vector<8x256xi1>
    %421 = vector.broadcast %cst_186 : f32 to vector<8x256xf32>
    %422 = arith.select %420, %418, %421 : vector<8x256xi1>, vector<8x256xf32>
    %c3_187 = arith.constant 3 : index
    %c1_188 = arith.constant 1 : index
    %c0_189 = arith.constant 0 : index
    %c0_190 = arith.constant 0 : index
    %423 = vector.load %arg4[%c3_187, %c1_188, %c0_189, %c0_190] : memref<4x9x8x1xf32, #tpu.memory_space<vmem>>, vector<1x1x8x1xf32>
    %424 = vector.shape_cast %423 : vector<1x1x8x1xf32> to vector<8x1xf32>
    %425 = vector.broadcast %424 : vector<8x1xf32> to vector<8x256xf32>
    %426 = arith.mulf %425, %422 : vector<8x256xf32>
    %427 = arith.addf %417, %426 : vector<8x256xf32>
    %c120_i32 = arith.constant 120 : i32
    %428 = tpu.dynamic_rotate %397 by %c120_i32 dim 1 : vector<8x256xf32>, i32 -> vector<8x256xf32>
    %429 = arith.andi %399, %405 : vector<1x256xi1>
    %cst_191 = arith.constant 0.000000e+00 : f32
    %430 = vector.shape_cast %429 : vector<1x256xi1> to vector<1x256xi1>
    %431 = vector.broadcast %430 : vector<1x256xi1> to vector<8x256xi1>
    %432 = vector.broadcast %cst_191 : f32 to vector<8x256xf32>
    %433 = arith.select %431, %428, %432 : vector<8x256xi1>, vector<8x256xf32>
    %c3_192 = arith.constant 3 : index
    %c2_193 = arith.constant 2 : index
    %c0_194 = arith.constant 0 : index
    %c0_195 = arith.constant 0 : index
    %434 = vector.load %arg4[%c3_192, %c2_193, %c0_194, %c0_195] : memref<4x9x8x1xf32, #tpu.memory_space<vmem>>, vector<1x1x8x1xf32>
    %435 = vector.shape_cast %434 : vector<1x1x8x1xf32> to vector<8x1xf32>
    %436 = vector.broadcast %435 : vector<8x1xf32> to vector<8x256xf32>
    %437 = arith.mulf %436, %433 : vector<8x256xf32>
    %438 = arith.addf %427, %437 : vector<8x256xf32>
    %c8_i32_196 = arith.constant 8 : i32
    %439 = tpu.dynamic_rotate %397 by %c8_i32_196 dim 1 : vector<8x256xf32>, i32 -> vector<8x256xf32>
    %cst_197 = arith.constant 0.000000e+00 : f32
    %440 = vector.shape_cast %403 : vector<1x256xi1> to vector<1x256xi1>
    %441 = vector.broadcast %440 : vector<1x256xi1> to vector<8x256xi1>
    %442 = vector.broadcast %cst_197 : f32 to vector<8x256xf32>
    %443 = arith.select %441, %439, %442 : vector<8x256xi1>, vector<8x256xf32>
    %c3_198 = arith.constant 3 : index
    %c3_199 = arith.constant 3 : index
    %c0_200 = arith.constant 0 : index
    %c0_201 = arith.constant 0 : index
    %444 = vector.load %arg4[%c3_198, %c3_199, %c0_200, %c0_201] : memref<4x9x8x1xf32, #tpu.memory_space<vmem>>, vector<1x1x8x1xf32>
    %445 = vector.shape_cast %444 : vector<1x1x8x1xf32> to vector<8x1xf32>
    %446 = vector.broadcast %445 : vector<8x1xf32> to vector<8x256xf32>
    %447 = arith.mulf %446, %443 : vector<8x256xf32>
    %448 = arith.addf %438, %447 : vector<8x256xf32>
    %c3_202 = arith.constant 3 : index
    %c4_203 = arith.constant 4 : index
    %c0_204 = arith.constant 0 : index
    %c0_205 = arith.constant 0 : index
    %449 = vector.load %arg4[%c3_202, %c4_203, %c0_204, %c0_205] : memref<4x9x8x1xf32, #tpu.memory_space<vmem>>, vector<1x1x8x1xf32>
    %450 = vector.shape_cast %449 : vector<1x1x8x1xf32> to vector<8x1xf32>
    %451 = vector.broadcast %450 : vector<8x1xf32> to vector<8x256xf32>
    %452 = arith.mulf %451, %397 : vector<8x256xf32>
    %453 = arith.addf %448, %452 : vector<8x256xf32>
    %c248_i32 = arith.constant 248 : i32
    %454 = tpu.dynamic_rotate %397 by %c248_i32 dim 1 : vector<8x256xf32>, i32 -> vector<8x256xf32>
    %cst_206 = arith.constant 0.000000e+00 : f32
    %455 = vector.shape_cast %405 : vector<1x256xi1> to vector<1x256xi1>
    %456 = vector.broadcast %455 : vector<1x256xi1> to vector<8x256xi1>
    %457 = vector.broadcast %cst_206 : f32 to vector<8x256xf32>
    %458 = arith.select %456, %454, %457 : vector<8x256xi1>, vector<8x256xf32>
    %c3_207 = arith.constant 3 : index
    %c5_208 = arith.constant 5 : index
    %c0_209 = arith.constant 0 : index
    %c0_210 = arith.constant 0 : index
    %459 = vector.load %arg4[%c3_207, %c5_208, %c0_209, %c0_210] : memref<4x9x8x1xf32, #tpu.memory_space<vmem>>, vector<1x1x8x1xf32>
    %460 = vector.shape_cast %459 : vector<1x1x8x1xf32> to vector<8x1xf32>
    %461 = vector.broadcast %460 : vector<8x1xf32> to vector<8x256xf32>
    %462 = arith.mulf %461, %458 : vector<8x256xf32>
    %463 = arith.addf %453, %462 : vector<8x256xf32>
    %c136_i32_211 = arith.constant 136 : i32
    %464 = tpu.dynamic_rotate %397 by %c136_i32_211 dim 1 : vector<8x256xf32>, i32 -> vector<8x256xf32>
    %465 = arith.andi %401, %403 : vector<1x256xi1>
    %cst_212 = arith.constant 0.000000e+00 : f32
    %466 = vector.shape_cast %465 : vector<1x256xi1> to vector<1x256xi1>
    %467 = vector.broadcast %466 : vector<1x256xi1> to vector<8x256xi1>
    %468 = vector.broadcast %cst_212 : f32 to vector<8x256xf32>
    %469 = arith.select %467, %464, %468 : vector<8x256xi1>, vector<8x256xf32>
    %c3_213 = arith.constant 3 : index
    %c6_214 = arith.constant 6 : index
    %c0_215 = arith.constant 0 : index
    %c0_216 = arith.constant 0 : index
    %470 = vector.load %arg4[%c3_213, %c6_214, %c0_215, %c0_216] : memref<4x9x8x1xf32, #tpu.memory_space<vmem>>, vector<1x1x8x1xf32>
    %471 = vector.shape_cast %470 : vector<1x1x8x1xf32> to vector<8x1xf32>
    %472 = vector.broadcast %471 : vector<8x1xf32> to vector<8x256xf32>
    %473 = arith.mulf %472, %469 : vector<8x256xf32>
    %474 = arith.addf %463, %473 : vector<8x256xf32>
    %c128_i32_217 = arith.constant 128 : i32
    %475 = tpu.dynamic_rotate %397 by %c128_i32_217 dim 1 : vector<8x256xf32>, i32 -> vector<8x256xf32>
    %cst_218 = arith.constant 0.000000e+00 : f32
    %476 = vector.shape_cast %401 : vector<1x256xi1> to vector<1x256xi1>
    %477 = vector.broadcast %476 : vector<1x256xi1> to vector<8x256xi1>
    %478 = vector.broadcast %cst_218 : f32 to vector<8x256xf32>
    %479 = arith.select %477, %475, %478 : vector<8x256xi1>, vector<8x256xf32>
    %c3_219 = arith.constant 3 : index
    %c7_220 = arith.constant 7 : index
    %c0_221 = arith.constant 0 : index
    %c0_222 = arith.constant 0 : index
    %480 = vector.load %arg4[%c3_219, %c7_220, %c0_221, %c0_222] : memref<4x9x8x1xf32, #tpu.memory_space<vmem>>, vector<1x1x8x1xf32>
    %481 = vector.shape_cast %480 : vector<1x1x8x1xf32> to vector<8x1xf32>
    %482 = vector.broadcast %481 : vector<8x1xf32> to vector<8x256xf32>
    %483 = arith.mulf %482, %479 : vector<8x256xf32>
    %484 = arith.addf %474, %483 : vector<8x256xf32>
    %c120_i32_223 = arith.constant 120 : i32
    %485 = tpu.dynamic_rotate %397 by %c120_i32_223 dim 1 : vector<8x256xf32>, i32 -> vector<8x256xf32>
    %486 = arith.andi %401, %405 : vector<1x256xi1>
    %cst_224 = arith.constant 0.000000e+00 : f32
    %487 = vector.shape_cast %486 : vector<1x256xi1> to vector<1x256xi1>
    %488 = vector.broadcast %487 : vector<1x256xi1> to vector<8x256xi1>
    %489 = vector.broadcast %cst_224 : f32 to vector<8x256xf32>
    %490 = arith.select %488, %485, %489 : vector<8x256xi1>, vector<8x256xf32>
    %c3_225 = arith.constant 3 : index
    %c8_226 = arith.constant 8 : index
    %c0_227 = arith.constant 0 : index
    %c0_228 = arith.constant 0 : index
    %491 = vector.load %arg4[%c3_225, %c8_226, %c0_227, %c0_228] : memref<4x9x8x1xf32, #tpu.memory_space<vmem>>, vector<1x1x8x1xf32>
    %492 = vector.shape_cast %491 : vector<1x1x8x1xf32> to vector<8x1xf32>
    %493 = vector.broadcast %492 : vector<8x1xf32> to vector<8x256xf32>
    %494 = arith.mulf %493, %490 : vector<8x256xf32>
    %495 = arith.addf %484, %494 : vector<8x256xf32>
    %496 = tpu.concatenate %126, %237, %360, %495 in 0 : vector<8x256xf32>, vector<8x256xf32>, vector<8x256xf32>, vector<8x256xf32> -> vector<32x256xf32>
    %c0_229 = arith.constant 0 : index
    %c0_230 = arith.constant 0 : index
    %497 = vector.load %arg5[%c0_229, %c0_230] : memref<32x32xf32, #tpu.memory_space<vmem>>, vector<32x32xf32>
    %cst_231 = arith.constant dense<0.000000e+00> : vector<32x256xf32>
    %498 = tpu.matmul %497, %496, %cst_231 {dimension_numbers = #tpu.dot_dimension_numbers<[1], [0], [0], [1], [0, 0, 1, 1], [], []>} : vector<32x32xf32>, vector<32x256xf32>, vector<32x256xf32> -> vector<32x256xf32>
    %c0_232 = arith.constant 0 : index
    %c0_233 = arith.constant 0 : index
    %499 = vector.load %arg6[%c0_232, %c0_233] : memref<32x1xf32, #tpu.memory_space<vmem>>, vector<32x1xf32>
    %500 = vector.broadcast %499 : vector<32x1xf32> to vector<32x256xf32>
    %501 = arith.addf %498, %500 : vector<32x256xf32>
    %cst_234 = arith.constant 5.000000e-01 : f32
    %502 = vector.broadcast %cst_234 : f32 to vector<32x256xf32>
    %503 = arith.mulf %502, %501 : vector<32x256xf32>
    %cst_235 = arith.constant 0.707106769 : f32
    %504 = vector.broadcast %cst_235 : f32 to vector<32x256xf32>
    %505 = arith.mulf %501, %504 : vector<32x256xf32>
    %cst_236 = arith.constant 0.000000e+00 : f32
    %506 = vector.broadcast %cst_236 : f32 to vector<32x256xf32>
    %507 = arith.cmpf oge, %505, %506 : vector<32x256xf32>
    %cst_237 = arith.constant 1.000000e+00 : f32
    %cst_238 = arith.constant -1.000000e+00 : f32
    %508 = vector.broadcast %cst_237 : f32 to vector<32x256xf32>
    %509 = vector.broadcast %cst_238 : f32 to vector<32x256xf32>
    %510 = arith.select %507, %508, %509 : vector<32x256xi1>, vector<32x256xf32>
    %511 = math.absf %505 : vector<32x256xf32>
    %cst_239 = arith.constant 0.327591091 : f32
    %512 = vector.broadcast %cst_239 : f32 to vector<32x256xf32>
    %513 = arith.mulf %512, %511 : vector<32x256xf32>
    %cst_240 = arith.constant 1.000000e+00 : f32
    %514 = vector.broadcast %cst_240 : f32 to vector<32x256xf32>
    %515 = arith.addf %514, %513 : vector<32x256xf32>
    %cst_241 = arith.constant 1.000000e+00 : f32
    %516 = vector.broadcast %cst_241 : f32 to vector<32x256xf32>
    %517 = arith.divf %516, %515 : vector<32x256xf32>
    %cst_242 = arith.constant 1.06140542 : f32
    %518 = vector.broadcast %cst_242 : f32 to vector<32x256xf32>
    %519 = arith.mulf %518, %517 : vector<32x256xf32>
    %cst_243 = arith.constant -1.45315206 : f32
    %520 = vector.broadcast %cst_243 : f32 to vector<32x256xf32>
    %521 = arith.addf %519, %520 : vector<32x256xf32>
    %522 = arith.mulf %521, %517 : vector<32x256xf32>
    %cst_244 = arith.constant 1.42141378 : f32
    %523 = vector.broadcast %cst_244 : f32 to vector<32x256xf32>
    %524 = arith.addf %522, %523 : vector<32x256xf32>
    %525 = arith.mulf %524, %517 : vector<32x256xf32>
    %cst_245 = arith.constant -0.284496725 : f32
    %526 = vector.broadcast %cst_245 : f32 to vector<32x256xf32>
    %527 = arith.addf %525, %526 : vector<32x256xf32>
    %528 = arith.mulf %527, %517 : vector<32x256xf32>
    %cst_246 = arith.constant 0.254829586 : f32
    %529 = vector.broadcast %cst_246 : f32 to vector<32x256xf32>
    %530 = arith.addf %528, %529 : vector<32x256xf32>
    %531 = arith.mulf %530, %517 : vector<32x256xf32>
    %cst_247 = arith.constant 0.000000e+00 : f32
    %532 = vector.broadcast %cst_247 : f32 to vector<32x256xf32>
    %533 = arith.subf %532, %511 : vector<32x256xf32>
    %534 = arith.mulf %533, %511 : vector<32x256xf32>
    %535 = math.exp %534 : vector<32x256xf32>
    %536 = arith.mulf %531, %535 : vector<32x256xf32>
    %cst_248 = arith.constant 1.000000e+00 : f32
    %537 = vector.broadcast %cst_248 : f32 to vector<32x256xf32>
    %538 = arith.subf %537, %536 : vector<32x256xf32>
    %539 = arith.mulf %510, %538 : vector<32x256xf32>
    %cst_249 = arith.constant 1.000000e+00 : f32
    %540 = vector.broadcast %cst_249 : f32 to vector<32x256xf32>
    %541 = arith.addf %540, %539 : vector<32x256xf32>
    %542 = arith.mulf %503, %541 : vector<32x256xf32>
    %543 = arith.mulf %542, %1 : vector<32x256xf32>
    %c0_250 = arith.constant 0 : index
    %c0_251 = arith.constant 0 : index
    %c0_252 = arith.constant 0 : index
    %544 = vector.load %arg7[%c0_250, %c0_251, %c0_252] : memref<1x32x256xf32, #tpu.memory_space<vmem>>, vector<1x32x256xf32>
    %545 = vector.shape_cast %544 : vector<1x32x256xf32> to vector<32x256xf32>
    %546 = vector.shape_cast %543 : vector<32x256xf32> to vector<1x32x256xf32>
    tpu.vector_store %arg7[%c0_250, %c0_251, %c0_252], %546 {strides = array<i32>} : memref<1x32x256xf32, #tpu.memory_space<vmem>>, vector<1x32x256xf32>,
    return
  }
  func.func @transform_0(%arg0: i32) -> (i32, i32, i32) {
    %c0_i32 = arith.constant 0 : i32
    %c0_i32_0 = arith.constant 0 : i32
    %c0_i32_1 = arith.constant 0 : i32
    return %arg0, %c0_i32, %c0_i32_0 : i32, i32, i32
  }
  func.func @transform_1(%arg0: i32) -> (i32, i32) {
    %c0_i32 = arith.constant 0 : i32
    %c0_i32_0 = arith.constant 0 : i32
    %c0_i32_1 = arith.constant 0 : i32
    return %c0_i32, %c0_i32_0 : i32, i32
  }
  func.func @transform_2(%arg0: i32) -> (i32, i32) {
    %c0_i32 = arith.constant 0 : i32
    %c0_i32_0 = arith.constant 0 : i32
    %c0_i32_1 = arith.constant 0 : i32
    return %c0_i32, %c0_i32_0 : i32, i32
  }
  func.func @transform_3(%arg0: i32) -> (i32, i32, i32, i32) {
    %c0_i32 = arith.constant 0 : i32
    %c0_i32_0 = arith.constant 0 : i32
    %c0_i32_1 = arith.constant 0 : i32
    %c0_i32_2 = arith.constant 0 : i32
    %c0_i32_3 = arith.constant 0 : i32
    return %c0_i32, %c0_i32_0, %c0_i32_1, %c0_i32_2 : i32, i32, i32, i32
  }
  func.func @transform_4(%arg0: i32) -> (i32, i32) {
    %c0_i32 = arith.constant 0 : i32
    %c0_i32_0 = arith.constant 0 : i32
    %c0_i32_1 = arith.constant 0 : i32
    return %c0_i32, %c0_i32_0 : i32, i32
  }
  func.func @transform_5(%arg0: i32) -> (i32, i32) {
    %c0_i32 = arith.constant 0 : i32
    %c0_i32_0 = arith.constant 0 : i32
    %c0_i32_1 = arith.constant 0 : i32
    return %c0_i32, %c0_i32_0 : i32, i32
  }
  func.func @transform_6(%arg0: i32) -> (i32, i32, i32) {
    %c0_i32 = arith.constant 0 : i32
    %c0_i32_0 = arith.constant 0 : i32
    %c0_i32_1 = arith.constant 0 : i32
    return %arg0, %c0_i32, %c0_i32_0 : i32, i32, i32
  }
}

</mosaic_0001>

<bundles_post_ra>
// kernel: mul.5
= control target key start
LH: loop header
LB: loop body
LE: loop exit
PB: predicated region body
PF: predicated region fallthrough
CT: control target
= control target key end

     0   :  { %vm8_vm0 = vcmask 64512   ;;  %s40_s8 = smov 8   ;;  %s41_s9 = smov 16   ;;  %vm14_vm1 = vcmask 261312   ;;  %vm20_vm2 = vcmask 195712   ;;  %vm26_vm3 = vcmask 130112   ;;  %s58_s0 = inlined_call_operand.vmem [shape: f32[4,8], index: 0, kind: input, shape index: {}]   ;;  %s59_s1 = inlined_call_operand.vmem [shape: f32[32], index: 1, kind: output, shape index: {}]  }
   0x1   :  { %v5_v0 = vld [vmem:[%s58_s0] sm:$0xf]  ;;  %s39_s0 = smov 24  }
   0x2   :  { %6 = vst [vmem:[#allocation1] sm:$0xf] %v5_v0 }
   0x9   :  { %v11_v1 = vld [vmem:[#allocation1 + $0x3] sm:$0x1]   ;;  %v23_v2 = vld [vmem:[#allocation1 + $0x1] sm:$0x1]   ;;  %v7_v3 = vld [vmem:[#allocation1] sm:$0x1]  }
   0xa   :  { %12 = vrot.lane.b32.xlu0 %v11_v1, %s39_s0  ;;  %24 = vrot.lane.b32.xlu1 %v23_v2, %s40_s8  ;;  %v17_v4 = vld [vmem:[#allocation1 + $0x2] sm:$0x1]   ;;  %9 = vst.msk [vmem:[#allocation0] sm:$0x1] %vm8_vm0, %v7_v3  }
   0xe   :  { %18 = vrot.lane.b32.xlu0 %v17_v4, %s41_s9 }
  0x7c   :  { %v13_v5 = vpop.permute.xlu0 %12   ;;  %v25_v6 = vpop.permute.xlu1 %24  }
  0x7d   :  { %15 = vst.msk [vmem:[#allocation0] sm:$0x1] %vm14_vm1, %v13_v5  }
  0x80   :  { %v19_v7 = vpop.permute.xlu0 %18  }
  0x81   :  { %21 = vst.msk [vmem:[#allocation0] sm:$0x1] %vm20_vm2, %v19_v7  }
  0x82   :  { %27 = vst.msk [vmem:[#allocation0] sm:$0x1] %vm26_vm3, %v25_v6  }
  0x89   :  { %v32_v8 = vld [vmem:[#allocation0] sm:$0x1] }
  0x8a   :  { %35 = vst [vmem:[%s59_s1] sm:$0x1] %v32_v8 }

// kernel: safm_forward.1
= control target key start
LH: loop header
LB: loop body
LE: loop exit
PB: predicated region body
PF: predicated region fallthrough
CT: control target
= control target key end

     0   :  { %s2156_s21 = smov 0   ;;  %s3814_s0 = inlined_call_operand.vmem [shape: f32[2,32,256], index: 0, kind: input, shape index: {}]   ;;  %s3815_s1 = inlined_call_operand.vmem [shape: s32[1,256], index: 1, kind: input, shape index: {}]   ;;  %s3816_s2 = inlined_call_operand.vmem [shape: s32[1,256], index: 2, kind: input, shape index: {}]   ;;  %s3817_s3 = inlined_call_operand.vmem [shape: f32[4,9,8,1], index: 3, kind: input, shape index: {}]   ;;  %s3818_s4 = inlined_call_operand.vmem [shape: f32[32,32], index: 4, kind: input, shape index: {}]   ;;  %s3819_s5 = inlined_call_operand.vmem [shape: f32[32,1], index: 5, kind: input, shape index: {}]   ;;  %s3820_s6 = inlined_call_operand.vmem [shape: f32[2,32,256], index: 6, kind: output, shape index: {}]  }
   0x1 LB: > { %s1949_s22 = sadd.s32 4294967295, %s2093_s21   ;;  %p1953_p0 = scmp.ge.s32.totalorder %s2093_s21, 1  ;;  %s2093_s21 = sphi %s2156_s21, %s16_s21  }
   0x2   : > { %p212_p1 = scmp.lt.s32.totalorder %s2093_s21, 3 }
   0x4   : > { %p213_p2 = pnand %p1953_p0, %p212_p1 }
   0x6   : > { %216 = sbr.rel (%p213_p2) target bundleno = 1370 (0x55a), region = 44 }
   0xb   : > { %p242_p3 = scmp.lt.s32.totalorder %s1949_s22, 1  ;;  %v3830_v0 = vmov 0   ;;  %s2096_s27 = smov 1   ;;  %v2185_v3 = vld [vmem:[%s3816_s2] sm:$0x3]  ;;  %v282_v4 = vlaneseq  ;;  %v1984_v15 = vld [vmem:[%s3817_s3 + $0xd8] sm:$0xff] }
   0xc   : > { %2044 = vset.pattern.permute.xlu1 %v3830_v0  ;;  %2043 = vset.pattern.permute.xlu0 %v3830_v0  ;;  %s2097_s28 = smov 127   ;;  %v262_v5 = vand.u32 1, %v2185_v3  ;;  %s2098_s7 = smov 126   ;;  %v264_v29 = vand.u32 2, %v2185_v3  ;;  %v266_v49 = vand.u32 4, %v2185_v3  ;;  %v1985_v16 = vld [vmem:[%s3817_s3 + $0xe0] sm:$0xff] }
   0xd   : > { %s3992_s22 = smov (!%p242_p3, %s1949_s22), 1  ;;  %v290_v6 = vshrl.u32 %v282_v4, 7  ;;  %v2193_v10 = vand.u32 127, %v282_v4  ;;  %s2099_s8 = smov 2  }
   0xe   : > { %s1999_s23 = sshll.u32 %s3992_s22, 6  ;;  %vm263_vm0 = vcmp.eq.s32.totalorder %v262_v5, 0  ;;  %vm265_vm5 = vcmp.eq.s32.totalorder %v264_v29, 0  ;;  %s2100_s9 = smov 124   ;;  %vm267_vm10 = vcmp.eq.s32.totalorder %v266_v49, 0 }
   0xf   : > { %s2174_s26 = scalar_lea.vmem %s3814_s0, %s1999_s23  ;;  %v2188_v7 = vsub.s32 0, %v290_v6  ;;  %v2190_v8 = vsub.s32 1, %v290_v6  ;;  %v554_v9 = vsel %vm263_vm0, 1, %v3830_v0  ;;  %vm3827_vm1 = vcmp.lt.s32.totalorder %v2193_v10, 1  ;;  %s2101_s10 = smov 4  }
  0x10   : > { %v258_v1 = vld [vmem:[%s2174_s26 + $0x30] sm:$0xff]  ;;  %v259_v2 = vld [vmem:[%s2174_s26 + $0x38] sm:$0xff]  ;;  %vm3823_vm2 = vcmp.lt.s32.totalorder %v2193_v10, 127  ;;  %v257_v27 = vld [vmem:[%s2174_s26 + $0x28] sm:$0xff]  ;;  %v891_v30 = vsel %vm265_vm5, 1, %v3830_v0  ;;  %vm3824_vm6 = vcmp.lt.s32.totalorder %v2193_v10, 126 }
  0x11   : > { %1201 = vrot.lane.b32.xlu1 %v258_v1, %s2096_s27  ;;  %1195 = vrot.lane.b32.xlu0 %v258_v1, %s2097_s28  ;;  %v562_v11 = vrot.slane %v554_v9, %v2190_v8  ;;  %v558_v12 = vrot.slane %v554_v9, %v2188_v7  ;;  %v256_v28 = vld [vmem:[%s2174_s26 + $0x20] sm:$0xff]  ;;  %v899_v31 = vrot.slane %v891_v30, %v2190_v8  ;;  %vm699_vm7 = vcmp.lt.s32.totalorder %v2193_v10, 2  ;;  %s2102_s11 = smov 112   ;;  %s2103_s12 = smov 16  }
  0x12   : > { %v895_v32 = vrot.slane %v891_v30, %v2188_v7  ;;  %v1239_v54 = vsel %vm267_vm10, 1, %v3830_v0  ;;  %vm1052_vm11 = vcmp.lt.s32.totalorder %v2193_v10, 4  ;;  %vm3826_vm12 = vcmp.lt.s32.totalorder %v2193_v10, 124  ;;  %v255_v30 = vld [vmem:[%s2174_s26 + $0x18] sm:$0xff]  ;;  %s2104_s15 = smov 96   ;;  %s2105_s16 = smov 32  }
  0x13   : > { %vm2199_vm3 = vcmp.eq.s32.totalorder %v562_v11, 1  ;;  %vm2203_vm4 = vcmp.eq.s32.totalorder %v558_v12, 1  ;;  %vm2233_vm8 = vcmp.eq.s32.totalorder %v899_v31, 1  ;;  %v1243_v57 = vrot.slane %v1239_v54, %v2188_v7  ;;  %v254_v31 = vld [vmem:[%s2174_s26 + $0x10] sm:$0xff]  ;;  %s2106_s24 = smov 34   ;;  %s2107_s19 = smov 17  }
  0x14   : > { %vm2237_vm9 = vcmp.eq.s32.totalorder %v895_v32, 1  ;;  %v1247_v58 = vrot.slane %v1239_v54, %v2190_v8  ;;  %v2378_v54 = vld [vmem:[%s3815_s1] sm:$0x3]  ;;  %vm315_vm0 = vcmp.lt.s32.totalorder %v2193_v10, 16  ;;  %s2108_s20 = smov 30   ;;  %vm636_vm10 = vcmp.lt.s32.totalorder %v2193_v10, 32 }
  0x15   : > { %1203 = vrot.lane.b32.xlu1 %v259_v2, %s2096_s27  ;;  %1197 = vrot.lane.b32.xlu0 %v259_v2, %s2097_s28  ;;  %vm1248_vm13 = vcmp.eq.s32.totalorder %v1243_v57, 1  ;;  %v1986_v57 = vld [vmem:[%s3817_s3 + $0xe8] sm:$0xff]  ;;  %s2109_s18 = smov 68   ;;  %s2114_s17 = smov 113  }
  0x16   : > { %vm1249_vm14 = vcmp.eq.s32.totalorder %v1247_v58, 1  ;;  %v1977_v58 = vld [vmem:[%s3817_s3 + $0xa0] sm:$0xff] }
  0x83   : > { %v1202_v13 = vpop.permute.xlu1 %1201  ;;  %v1196_v14 = vpop.permute.xlu0 %1195 }
  0x87   : > { %v1204_v17 = vpop.permute.xlu1 %1203  ;;  %v1198_v18 = vpop.permute.xlu0 %1197 }
  0x88   : > { %v1205_v19 = vsel %vm3827_vm1, %v1202_v13, %v1204_v17  ;;  %v1206_v20 = vsel %vm3827_vm1, %v1204_v17, %v1202_v13  ;;  %v1199_v21 = vsel %vm3823_vm2, %v1196_v14, %v1198_v18  ;;  %v1200_v22 = vsel %vm3823_vm2, %v1198_v18, %v1196_v14 }
  0x89   : > { %v1208_v23 = vsel %vm2199_vm3, %v1200_v22, %v1205_v19  ;;  %v1207_v24 = vsel %vm2203_vm4, %v1199_v21, %v1206_v20 }
  0x8a   : > { %v1210_v25 = vmax.f32 %v259_v2, %v1208_v23  ;;  %v1209_v26 = vmax.f32 %v258_v1, %v1207_v24 }
  0x8c   : > { %1213 = vrot.lane.b32.xlu1 %v1210_v25, %s2098_s7  ;;  %1211 = vrot.lane.b32.xlu0 %v1209_v26, %s2098_s7 }
  0x90   : > { %1219 = vrot.lane.b32.xlu1 %v1210_v25, %s2099_s8  ;;  %1217 = vrot.lane.b32.xlu0 %v1209_v26, %s2099_s8 }
  0x94   : > { %865 = vrot.lane.b32.xlu1 %v257_v27, %s2097_s28  ;;  %863 = vrot.lane.b32.xlu0 %v256_v28, %s2097_s28 }
  0xfe   : > { %v1214_v33 = vpop.permute.xlu1 %1213  ;;  %v1212_v34 = vpop.permute.xlu0 %1211 }
  0xff   : > { %v1215_v39 = vsel %vm3824_vm6, %v1212_v34, %v1214_v33  ;;  %v1216_v40 = vsel %vm3824_vm6, %v1214_v33, %v1212_v34 }
 0x102   : > { %v1220_v37 = vpop.permute.xlu1 %1219  ;;  %v1218_v38 = vpop.permute.xlu0 %1217 }
 0x103   : > { %v1221_v41 = vsel %vm699_vm7, %v1218_v38, %v1220_v37  ;;  %v1222_v42 = vsel %vm699_vm7, %v1220_v37, %v1218_v38 }
 0x104   : > { %v1224_v43 = vsel %vm2233_vm8, %v1216_v40, %v1221_v41  ;;  %v1223_v44 = vsel %vm2237_vm9, %v1215_v39, %v1222_v42 }
 0x105   : > { %v1226_v45 = vmax.f32 %v1210_v25, %v1224_v43  ;;  %v1225_v46 = vmax.f32 %v1209_v26, %v1223_v44 }
 0x106   : > { %v866_v47 = vpop.permute.xlu1 %865  ;;  %v864_v48 = vpop.permute.xlu0 %863 }
 0x107   : > { %1229 = vrot.lane.b32.xlu1 %v1226_v45, %s2100_s9  ;;  %1227 = vrot.lane.b32.xlu0 %v1225_v46, %s2100_s9  ;;  %v867_v59 = vsel %vm3823_vm2, %v864_v48, %v866_v47  ;;  %v868_v60 = vsel %vm3823_vm2, %v866_v47, %v864_v48 }
 0x10b   : > { %1235 = vrot.lane.b32.xlu1 %v1226_v45, %s2101_s10  ;;  %1233 = vrot.lane.b32.xlu0 %v1225_v46, %s2101_s10 }
 0x10f   : > { %871 = vrot.lane.b32.xlu1 %v257_v27, %s2096_s27  ;;  %869 = vrot.lane.b32.xlu0 %v256_v28, %s2096_s27 }
 0x179   : > { %v1230_v50 = vpop.permute.xlu1 %1229  ;;  %v1228_v51 = vpop.permute.xlu0 %1227 }
 0x17a   : > { %v1231_v9 = vsel %vm3826_vm12, %v1228_v51, %v1230_v50  ;;  %v1232_v11 = vsel %vm3826_vm12, %v1230_v50, %v1228_v51  ;;  %vm1020_vm12 = vcmp.lt.s32.totalorder %v2193_v10, 60 }
 0x17d   : > { %v1236_v52 = vpop.permute.xlu1 %1235  ;;  %v1234_v53 = vpop.permute.xlu0 %1233 }
 0x17e   : > { %v1237_v5 = vsel %vm1052_vm11, %v1234_v53, %v1236_v52  ;;  %v1238_v6 = vsel %vm1052_vm11, %v1236_v52, %v1234_v53  ;;  %v1976_v52 = vld [vmem:[%s3817_s3 + $0x98] sm:$0xff]  ;;  %v1975_v53 = vld [vmem:[%s3817_s3 + $0x90] sm:$0xff] }
 0x17f   : > { %v1250_v12 = vsel %vm1248_vm13, %v1231_v9, %v1238_v6  ;;  %v1251_v13 = vsel %vm1249_vm14, %v1232_v11, %v1237_v5  ;;  %v1968_v5 = vld [vmem:[%s3817_s3 + $0x58] sm:$0xff]  ;;  %v1958_v6 = vld [vmem:[%s3817_s3 + $0x8] sm:$0xff] }
 0x180   : > { %v2289_v14 = vmax.f32 %v1225_v46, %v1250_v12  ;;  %v2291_v17 = vmax.f32 %v1226_v45, %v1251_v13 }
 0x181   : > { %v872_v55 = vpop.permute.xlu1 %871  ;;  %v870_v56 = vpop.permute.xlu0 %869 }
 0x182   : > { %v873_v61 = vsel %vm3827_vm1, %v870_v56, %v872_v55  ;;  %v874_v62 = vsel %vm3827_vm1, %v872_v55, %v870_v56  ;;  %v268_v55 = vand.u32 1, %v2378_v54  ;;  %v1966_v56 = vld [vmem:[%s3817_s3 + $0x48] sm:$0xff] }
 0x183   : > { %v875_v63 = vsel %vm2203_vm4, %v867_v59, %v874_v62  ;;  %v876_v1 = vsel %vm2199_vm3, %v868_v60, %v873_v61  ;;  %v1967_v59 = vld [vmem:[%s3817_s3 + $0x50] sm:$0xff]  ;;  %v301_v61 = vld [vmem:[%s3817_s3] sm:$0xff] }
 0x184   : > { %v877_v2 = vmax.f32 %v256_v28, %v875_v63  ;;  %v878_v4 = vmax.f32 %v257_v27, %v876_v1  ;;  %vm269_vm15 = vcmp.eq.s32.totalorder %v268_v55, 0  ;;  %v1987_v62 = vld [vmem:[%s3817_s3 + $0xf0] sm:$0xff]  ;;  %v270_v55 = vand.u32 2, %v2378_v54 }
 0x185   : > { %v581_v60 = vsel %vm269_vm15, 1, %v3830_v0  ;;  %vm596_vm15 = vcmp.ge.s32.totalorder %v2378_v54, 2 }
 0x186   : > { %879 = vrot.lane.b32.xlu0 %v877_v2, %s2098_s7  ;;  %881 = vrot.lane.b32.xlu1 %v878_v4, %s2098_s7  ;;  %v585_v63 = vrot.slane %v581_v60, %v2188_v7  ;;  %v589_v1 = vrot.slane %v581_v60, %v2190_v8 }
 0x188   : > { %vm2422_vm5 = vcmp.eq.s32.totalorder %v589_v1, 1  ;;  %v1980_v1 = vld [vmem:[%s3817_s3 + $0xb8] sm:$0xff] }
 0x18a   : > { %885 = vrot.lane.b32.xlu0 %v877_v2, %s2099_s8  ;;  %887 = vrot.lane.b32.xlu1 %v878_v4, %s2099_s8 }
 0x18e   : > { %1254 = vrot.lane.b32.xlu0 %v2289_v14, %s2102_s11  ;;  %1256 = vrot.lane.b32.xlu1 %v2291_v17, %s2102_s11 }
 0x192   : > { %1260 = vrot.lane.b32.xlu0 %v2289_v14, %s2103_s12  ;;  %1262 = vrot.lane.b32.xlu1 %v2291_v17, %s2103_s12 }
 0x1f8   : > { %v880_v18 = vpop.permute.xlu0 %879  ;;  %v882_v19 = vpop.permute.xlu1 %881 }
 0x1f9   : > { %v883_v22 = vsel %vm3824_vm6, %v880_v18, %v882_v19  ;;  %v884_v23 = vsel %vm3824_vm6, %v882_v19, %v880_v18 }
 0x1fc   : > { %v886_v20 = vpop.permute.xlu0 %885  ;;  %v888_v21 = vpop.permute.xlu1 %887 }
 0x1fd   : > { %v889_v24 = vsel %vm699_vm7, %v886_v20, %v888_v21  ;;  %v890_v25 = vsel %vm699_vm7, %v888_v21, %v886_v20 }
 0x1fe   : > { %v902_v26 = vsel %vm2237_vm9, %v883_v22, %v890_v25  ;;  %v903_v27 = vsel %vm2233_vm8, %v884_v23, %v889_v24  ;;  %vm271_vm8 = vcmp.eq.s32.totalorder %v270_v55, 0  ;;  %vm3822_vm9 = vcmp.lt.s32.totalorder %v2193_v10, 96  ;;  %v1973_v55 = vld [vmem:[%s3817_s3 + $0x80] sm:$0xff] }
 0x1ff   : > { %v2313_v28 = vmax.f32 %v877_v2, %v902_v26  ;;  %v2315_v29 = vmax.f32 %v878_v4, %v903_v27 }
 0x200   : > { %v2331_v32 = vpop.permute.xlu0 %1254  ;;  %v2333_v33 = vpop.permute.xlu1 %1256 }
 0x201   : > { %906 = vrot.lane.b32.xlu0 %v2313_v28, %s2102_s11  ;;  %908 = vrot.lane.b32.xlu1 %v2315_v29, %s2102_s11 }
 0x204   : > { %v2335_v34 = vpop.permute.xlu0 %1260  ;;  %v2337_v35 = vpop.permute.xlu1 %1262 }
 0x205   : > { %912 = vrot.lane.b32.xlu0 %v2313_v28, %s2103_s12  ;;  %914 = vrot.lane.b32.xlu1 %v2315_v29, %s2103_s12  ;;  %v1264_v22 = vsel %vm315_vm0, %v2335_v34, %v2337_v35  ;;  %v1265_v23 = vsel %vm315_vm0, %v2337_v35, %v2335_v34 }
 0x209   : > { %544 = vrot.lane.b32.xlu1 %v255_v30, %s2097_s28  ;;  %542 = vrot.lane.b32.xlu0 %v254_v31, %s2097_s28 }
 0x20d   : > { %550 = vrot.lane.b32.xlu1 %v255_v30, %s2096_s27  ;;  %548 = vrot.lane.b32.xlu0 %v254_v31, %s2096_s27 }
 0x273   : > { %v907_v36 = vpop.permute.xlu0 %906  ;;  %v909_v37 = vpop.permute.xlu1 %908 }
 0x277   : > { %v913_v38 = vpop.permute.xlu0 %912  ;;  %v915_v39 = vpop.permute.xlu1 %914 }
 0x278   : > { %v916_v2 = vsel %vm315_vm0, %v913_v38, %v915_v39  ;;  %v917_v4 = vsel %vm315_vm0, %v915_v39, %v913_v38 }
 0x27b   : > { %v545_v40 = vpop.permute.xlu1 %544  ;;  %v543_v41 = vpop.permute.xlu0 %542 }
 0x27c   : > { %v546_v44 = vsel %vm3823_vm2, %v543_v41, %v545_v40  ;;  %v547_v45 = vsel %vm3823_vm2, %v545_v40, %v543_v41 }
 0x27f   : > { %v551_v42 = vpop.permute.xlu1 %550  ;;  %v549_v43 = vpop.permute.xlu0 %548 }
 0x280   : > { %v552_v46 = vsel %vm3827_vm1, %v549_v43, %v551_v42  ;;  %v553_v47 = vsel %vm3827_vm1, %v551_v42, %v549_v43  ;;  %v1959_v42 = vld [vmem:[%s3817_s3 + $0x10] sm:$0xff]  ;;  %v1969_v43 = vld [vmem:[%s3817_s3 + $0x60] sm:$0xff] }
 0x281   : > { %v565_v48 = vsel %vm2203_vm4, %v546_v44, %v553_v47  ;;  %v566_v49 = vsel %vm2199_vm3, %v547_v45, %v552_v46  ;;  %vm3821_vm3 = vcmp.lt.s32.totalorder %v2193_v10, 112  ;;  %vm2418_vm4 = vcmp.eq.s32.totalorder %v585_v63, 1  ;;  %v1979_v46 = vld [vmem:[%s3817_s3 + $0xb0] sm:$0xff]  ;;  %v1989_v47 = vld [vmem:[%s3817_s3 + $0x100] sm:$0xff]  ;;  %v1990_v63 = vld [vmem:[%s3817_s3 + $0x108] sm:$0xff] }
 0x282   : > { %v2351_v50 = vmax.f32 %v254_v31, %v565_v48  ;;  %v2353_v51 = vmax.f32 %v255_v30, %v566_v49  ;;  %v910_v9 = vsel %vm3821_vm3, %v907_v36, %v909_v37  ;;  %v911_v11 = vsel %vm3821_vm3, %v909_v37, %v907_v36  ;;  %v1988_v30 = vld [vmem:[%s3817_s3 + $0xf8] sm:$0xff] }
 0x283   : > { %v918_v18 = vsel %vm2418_vm4, %v910_v9, %v917_v4  ;;  %v919_v19 = vsel %vm2422_vm5, %v911_v11, %v916_v2  ;;  %v1258_v24 = vsel %vm3821_vm3, %v2331_v32, %v2333_v33  ;;  %v1259_v25 = vsel %vm3821_vm3, %v2333_v33, %v2331_v32 }
 0x284   : > { %569 = vrot.lane.b32.xlu0 %v2351_v50, %s2102_s11  ;;  %571 = vrot.lane.b32.xlu1 %v2353_v51, %s2102_s11  ;;  %v2431_v20 = vmax.f32 %v2313_v28, %v918_v18  ;;  %v2434_v21 = vmax.f32 %v2315_v29, %v919_v19  ;;  %v1266_v26 = vsel %vm2418_vm4, %v1258_v24, %v1265_v23 }
 0x285   : > { %v1267_v27 = vsel %vm2422_vm5, %v1259_v25, %v1264_v22  ;;  %v2463_v28 = vmax.f32 %v2289_v14, %v1266_v26  ;;  %v1978_v14 = vld [vmem:[%s3817_s3 + $0xa8] sm:$0xff] }
 0x286   : > { %v2466_v29 = vmax.f32 %v2291_v17, %v1267_v27 }
 0x288   : > { %575 = vrot.lane.b32.xlu0 %v2351_v50, %s2103_s12  ;;  %577 = vrot.lane.b32.xlu1 %v2353_v51, %s2103_s12 }
 0x28c   : > { %1336 = vperm.xlu0 %2043, %v1984_v15   ;;  %1360 = vperm.xlu1 %2044, %v1985_v16  }
 0x290   : > { %1009 = vperm.xlu0 %2043, %v1976_v52   ;;  %978 = vperm.xlu1 %2044, %v1975_v53  }
 0x294   : > { %625 = vperm.xlu0 %2043, %v1966_v56   ;;  %1392 = vperm.xlu1 %2044, %v1986_v57  }
 0x298   : > { %1041 = vperm.xlu0 %2043, %v1977_v58   ;;  %656 = vperm.xlu1 %2044, %v1967_v59   ;;  %v1970_v58 = vld [vmem:[%s3817_s3 + $0x68] sm:$0xff]  ;;  %v1960_v59 = vld [vmem:[%s3817_s3 + $0x18] sm:$0xff] }
 0x29c   : > { %304 = vperm.xlu0 %2043, %v301_v61   ;;  %1416 = vperm.xlu1 %2044, %v1987_v62   ;;  %v934_v62 = vsel %vm271_vm8, 1, %v3830_v0  ;;  %vm604_vm8 = vcmp.lt.s32.totalorder %v2193_v10, 34 }
 0x29d   : > { %v938_v2 = vrot.slane %v934_v62, %v2188_v7  ;;  %v942_v4 = vrot.slane %v934_v62, %v2190_v8  ;;  %v1964_v62 = vld [vmem:[%s3817_s3 + $0x38] sm:$0xff] }
 0x29f   : > { %vm2570_vm13 = vcmp.eq.s32.totalorder %v938_v2, 1  ;;  %vm2574_vm14 = vcmp.eq.s32.totalorder %v942_v4, 1  ;;  %v1974_v4 = vld [vmem:[%s3817_s3 + $0x88] sm:$0xff] }
 0x2a0   : > { %688 = vperm.xlu0 %2043, %v1968_v5   ;;  %335 = vperm.xlu1 %2044, %v1958_v6  }
 0x2a4   : > { %922 = vrot.lane.b32.xlu0 %v2431_v20, %s2104_s15  ;;  %924 = vrot.lane.b32.xlu1 %v2434_v21, %s2104_s15 }
 0x2a8   : > { %928 = vrot.lane.b32.xlu0 %v2431_v20, %s2105_s16  ;;  %930 = vrot.lane.b32.xlu1 %v2434_v21, %s2105_s16 }
 0x2ac   : > { %1270 = vrot.lane.b32.xlu0 %v2463_v28, %s2104_s15  ;;  %1272 = vrot.lane.b32.xlu1 %v2466_v29, %s2104_s15 }
 0x2b0   : > { %1276 = vrot.lane.b32.xlu0 %v2463_v28, %s2105_s16  ;;  %1278 = vrot.lane.b32.xlu1 %v2466_v29, %s2105_s16 }
 0x2b4   : > { %1427 = vperm.xlu0 %2043, %v1988_v30   ;;  %1072 = vperm.xlu1 %2044, %v1978_v14  }
 0x2f6   : > { %v570_v17 = vpop.permute.xlu0 %569  ;;  %v572_v31 = vpop.permute.xlu1 %571 }
 0x2f7   : > { %v573_v34 = vsel %vm3821_vm3, %v570_v17, %v572_v31  ;;  %v574_v35 = vsel %vm3821_vm3, %v572_v31, %v570_v17 }
 0x2fa   : > { %v576_v32 = vpop.permute.xlu0 %575  ;;  %v578_v33 = vpop.permute.xlu1 %577 }
 0x2fb   : > { %v579_v36 = vsel %vm315_vm0, %v576_v32, %v578_v33  ;;  %v580_v37 = vsel %vm315_vm0, %v578_v33, %v576_v32 }
 0x2fc   : > { %v592_v38 = vsel %vm2418_vm4, %v573_v34, %v580_v37  ;;  %v593_v39 = vsel %vm2422_vm5, %v574_v35, %v579_v36  ;;  %vm598_vm4 = vcmp.ge.s32.totalorder %v2185_v3, 2 }
 0x2fd   : > { %v2493_v40 = vmax.f32 %v2351_v50, %v592_v38  ;;  %v2496_v41 = vmax.f32 %v2353_v51, %v593_v39  ;;  %v2523_v50 = vld [vmem:[%s2174_s26 + $0x8] sm:$0xff]  ;;  %v2526_v51 = vld [vmem:[%s2174_s26] sm:$0xff]  ;;  %v1991_v38 = vld [vmem:[%s3817_s3 + $0x110] sm:$0xff] }
 0x2fe   : > { %v1981_v39 = vld [vmem:[%s3817_s3 + $0xc0] sm:$0xff]  ;;  %vm607_vm5 = vmand %vm596_vm15, %vm598_vm4 }
 0x2ff   : > { %600 = vrot.lane.b32.xlu1 %v2493_v40, %s2106_s24  ;;  %602 = vrot.lane.b32.xlu0 %v2496_v41, %s2106_s24 }
 0x303   : > { %632 = vrot.lane.b32.xlu1 %v2493_v40, %s2105_s16  ;;  %634 = vrot.lane.b32.xlu0 %v2496_v41, %s2105_s16  ;;  %s2110_s16 = smov 64  }
 0x307   : > { %v2508_v44 = vpop.permute.xlu0 %1336  ;;  %367 = vperm.xlu1 %2044, %v1959_v42   ;;  %719 = vperm.xlu0 %2043, %v1969_v43   ;;  %v2510_v45 = vpop.permute.xlu1 %1360  ;;  %v1972_v42 = vld [vmem:[%s3817_s3 + $0x78] sm:$0xff]  ;;  %v1962_v43 = vld [vmem:[%s3817_s3 + $0x28] sm:$0xff] }
 0x30b   : > { %v2518_v48 = vpop.permute.xlu0 %1009  ;;  %1083 = vperm.xlu1 %2044, %v1979_v46   ;;  %1451 = vperm.xlu0 %2043, %v1989_v47   ;;  %v2520_v49 = vpop.permute.xlu1 %978  ;;  %v1992_v46 = vld [vmem:[%s3817_s3 + $0x118] sm:$0xff]  ;;  %v1982_v47 = vld [vmem:[%s3817_s3 + $0xc8] sm:$0xff] }
 0x30f   : > { %v2528_v15 = vpop.permute.xlu0 %625  ;;  %v2530_v16 = vpop.permute.xlu1 %1392  ;;  %280 = vrot.lane.b32.xlu0 %v2523_v50, %s2107_s19  ;;  %278 = vrot.lane.b32.xlu1 %v2526_v51, %s2107_s19  ;;  %s2111_s19 = smov 60  }
 0x313   : > { %v2534_v52 = vpop.permute.xlu0 %1041  ;;  %v2536_v53 = vpop.permute.xlu1 %656  ;;  %313 = vrot.lane.b32.xlu0 %v2523_v50, %s2103_s12  ;;  %311 = vrot.lane.b32.xlu1 %v2526_v51, %s2103_s12 }
 0x317   : > { %v2543_v56 = vpop.permute.xlu0 %304  ;;  %v2545_v57 = vpop.permute.xlu1 %1416  ;;  %665 = vrot.lane.b32.xlu0 %v2496_v41, %s2108_s20  ;;  %663 = vrot.lane.b32.xlu1 %v2493_v40, %s2108_s20  ;;  %s2112_s20 = smov 15  }
 0x31b   : > { %v2555_v60 = vpop.permute.xlu0 %688  ;;  %v2557_v61 = vpop.permute.xlu1 %335  ;;  %730 = vperm.xlu0 %2043, %v1970_v58   ;;  %398 = vperm.xlu1 %2044, %v1960_v59   ;;  %v1963_v58 = vld [vmem:[%s3817_s3 + $0x30] sm:$0xff] }
 0x31c   : > { %v1983_v59 = vld [vmem:[%s3817_s3 + $0xd0] sm:$0xff] }
 0x31f   : > { %v923_v5 = vpop.permute.xlu0 %922  ;;  %v925_v6 = vpop.permute.xlu1 %924  ;;  %1476 = vperm.xlu0 %2043, %v1990_v63   ;;  %1114 = vperm.xlu1 %2044, %v1980_v1   ;;  %v608_v63 = vsel %vm607_vm5, 1, %v3830_v0 }
 0x320   : > { %v926_v18 = vsel %vm3822_vm9, %v923_v5, %v925_v6  ;;  %v927_v19 = vsel %vm3822_vm9, %v925_v6, %v923_v5  ;;  %v639_v5 = vsel %vm596_vm15, 1, %v3830_v0  ;;  %v612_v6 = vrot.slane %v608_v63, %v2188_v7 }
 0x321   : > { %v616_v9 = vrot.slane %v608_v63, %v2190_v8  ;;  %v643_v11 = vrot.slane %v639_v5, %v2188_v7 }
 0x323   : > { %v929_v12 = vpop.permute.xlu0 %928  ;;  %v931_v13 = vpop.permute.xlu1 %930  ;;  %vm648_vm5 = vcmp.eq.s32.totalorder %v643_v11, 1 }
 0x324   : > { %v932_v22 = vsel %vm636_vm10, %v929_v12, %v931_v13  ;;  %v933_v23 = vsel %vm636_vm10, %v931_v13, %v929_v12  ;;  %v647_v12 = vrot.slane %v639_v5, %v2190_v8 }
 0x325   : > { %v945_v24 = vsel %vm2570_vm13, %v926_v18, %v933_v23  ;;  %v946_v25 = vsel %vm2574_vm14, %v927_v19, %v932_v22 }
 0x326   : > { %v2591_v26 = vmax.f32 %v2431_v20, %v945_v24  ;;  %v2594_v27 = vmax.f32 %v2434_v21, %v946_v25  ;;  %vm649_vm3 = vcmp.eq.s32.totalorder %v647_v12, 1 }
 0x327   : > { %v1271_v30 = vpop.permute.xlu0 %1270  ;;  %v1273_v14 = vpop.permute.xlu1 %1272 }
 0x328   : > { %953 = vrot.lane.b32.xlu0 %v2591_v26, %s2109_s18  ;;  %955 = vrot.lane.b32.xlu1 %v2594_v27, %s2109_s18  ;;  %v1274_v32 = vsel %vm3822_vm9, %v1271_v30, %v1273_v14  ;;  %v1275_v33 = vsel %vm3822_vm9, %v1273_v14, %v1271_v30  ;;  %s2115_s18 = smov 8  }
 0x32b   : > { %v1277_v17 = vpop.permute.xlu0 %1276  ;;  %v1279_v31 = vpop.permute.xlu1 %1278 }
 0x32c   : > { %985 = vrot.lane.b32.xlu0 %v2591_v26, %s2110_s16  ;;  %987 = vrot.lane.b32.xlu1 %v2594_v27, %s2110_s16  ;;  %v1280_v20 = vsel %vm636_vm10, %v1277_v17, %v1279_v31  ;;  %v1281_v21 = vsel %vm636_vm10, %v1279_v31, %v1277_v17 }
 0x32d   : > { %v1282_v34 = vsel %vm2570_vm13, %v1274_v32, %v1281_v21  ;;  %v1283_v35 = vsel %vm2574_vm14, %v1275_v33, %v1280_v20  ;;  %vm617_vm13 = vcmp.eq.s32.totalorder %v612_v6, 1  ;;  %vm618_vm14 = vcmp.eq.s32.totalorder %v616_v9, 1 }
 0x32e   : > { %v2619_v36 = vmax.f32 %v2463_v28, %v1282_v34  ;;  %v2622_v37 = vmax.f32 %v2466_v29, %v1283_v35  ;;  %v1971_v28 = vld [vmem:[%s3817_s3 + $0x70] sm:$0xff]  ;;  %v1961_v29 = vld [vmem:[%s3817_s3 + $0x20] sm:$0xff] }
 0x32f   : > { %v2693_v1 = vpop.permute.xlu0 %1427  ;;  %v2695_v2 = vpop.permute.xlu1 %1072 }
 0x330   : > { %1018 = vrot.lane.b32.xlu0 %v2594_v27, %s2111_s19  ;;  %1016 = vrot.lane.b32.xlu1 %v2591_v26, %s2111_s19 }
 0x334   : > { %1050 = vrot.lane.b32.xlu0 %v2594_v27, %s2101_s10  ;;  %1048 = vrot.lane.b32.xlu1 %v2591_v26, %s2101_s10 }
 0x338   : > { %1286 = vrot.lane.b32.xlu0 %v2619_v36, %s2110_s16  ;;  %1288 = vrot.lane.b32.xlu1 %v2622_v37, %s2110_s16  ;;  %s2116_s16 = smov 120  }
 0x33c   : > { %344 = vrot.lane.b32.xlu0 %v2523_v50, %s2112_s20  ;;  %342 = vrot.lane.b32.xlu1 %v2526_v51, %s2112_s20 }
 0x340   : > { %697 = vrot.lane.b32.xlu0 %v2496_v41, %s2099_s8  ;;  %695 = vrot.lane.b32.xlu1 %v2493_v40, %s2099_s8 }
 0x344   : > { %761 = vperm.xlu0 %2043, %v1971_v28   ;;  %409 = vperm.xlu1 %2044, %v1961_v29  }
 0x348   : > { %1500 = vperm.xlu0 %2043, %v1991_v38   ;;  %1139 = vperm.xlu1 %2044, %v1981_v39  }
 0x34c   : > { %376 = vrot.lane.b32.xlu0 %v2523_v50, %s2096_s27  ;;  %374 = vrot.lane.b32.xlu1 %v2526_v51, %s2096_s27 }
 0x350   : > { %1092 = vrot.lane.b32.xlu0 %v2594_v27, %s2100_s9  ;;  %1090 = vrot.lane.b32.xlu1 %v2591_v26, %s2100_s9  ;;  %s3768_s9 = scalar_lea.vmem %s3820_s6, %s1999_s23 }
 0x354   : > { %793 = vperm.xlu0 %2043, %v1972_v42   ;;  %440 = vperm.xlu1 %2044, %v1962_v43  }
 0x358   : > { %1525 = vperm.xlu0 %2043, %v1992_v46   ;;  %1163 = vperm.xlu1 %2044, %v1982_v47  }
 0x35c   : > { %739 = vrot.lane.b32.xlu0 %v2496_v41, %s2098_s7  ;;  %737 = vrot.lane.b32.xlu1 %v2493_v40, %s2098_s7  ;;  %s2113_s7 = smov 98  }
 0x360   : > { %824 = vperm.xlu0 %2043, %v1973_v55   ;;  %472 = vperm.xlu1 %2044, %v1963_v58  }
 0x364   : > { %416 = vrot.lane.b32.xlu0 %v2526_v51, %s2097_s28  ;;  %1188 = vperm.xlu1 %2044, %v1983_v59  }
 0x368   : > { %768 = vrot.lane.b32.xlu0 %v2493_v40, %s2113_s7  ;;  %418 = vrot.lane.b32.xlu1 %v2523_v50, %s2097_s28 }
 0x36c   : > { %503 = vperm.xlu0 %2043, %v1964_v62   ;;  %770 = vrot.lane.b32.xlu1 %v2496_v41, %s2113_s7 }
 0x370   : > { %856 = vperm.xlu1 %2044, %v1974_v4   ;;  %447 = vrot.lane.b32.xlu0 %v2526_v51, %s2114_s17 }
 0x371   : > { %v603_v13 = vpop.permute.xlu0 %602  ;;  %v601_v18 = vpop.permute.xlu1 %600 }
 0x372   : > { %v605_v19 = vsel %vm604_vm8, %v601_v18, %v603_v13  ;;  %v606_v22 = vsel %vm604_vm8, %v603_v13, %v601_v18  ;;  %vm274_vm8 = vcmp.ge.s32.totalorder %v2378_v54, 1 }
 0x373   : > { %v619_v23 = vsel %vm617_vm13, %v606_v22, 0.0  ;;  %v620_v24 = vsel %vm618_vm14, %v605_v19, 0.0  ;;  %vm276_vm13 = vcmp.ge.s32.totalorder %v2185_v3, 1  ;;  %v318_v46 = vsel %vm274_vm8, 1, %v3830_v0 }
 0x374   : > { %v628_v21 = vmul.f32 %v2528_v15, %v619_v23  ;;  %v629_v32 = vmul.f32 %v2528_v15, %v620_v24  ;;  %v322_v55 = vrot.slane %v318_v46, %v2188_v7  ;;  %v326_v58 = vrot.slane %v318_v46, %v2190_v8 }
 0x375   : > { %v635_v25 = vpop.permute.xlu0 %634  ;;  %v633_v30 = vpop.permute.xlu1 %632 }
 0x376   : > { %v637_v14 = vsel %vm636_vm10, %v633_v30, %v635_v25  ;;  %v638_v17 = vsel %vm636_vm10, %v635_v25, %v633_v30  ;;  %vm287_vm10 = vmand %vm274_vm8, %vm276_vm13  ;;  %vm2761_vm9 = vcmp.eq.s32.totalorder %v326_v58, 1 }
 0x377   : > { %v650_v31 = vsel %vm648_vm5, %v638_v17, 0.0  ;;  %v651_v20 = vsel %vm649_vm3, %v637_v14, 0.0  ;;  %vm3825_vm3 = vcmp.lt.s32.totalorder %v2185_v3, 14  ;;  %v288_v15 = vsel %vm287_vm10, 1, %v3830_v0 }
 0x378   : > { %v659_v33 = vmul.f32 %v2536_v53, %v650_v31  ;;  %v660_v34 = vmul.f32 %v2536_v53, %v651_v20  ;;  %vm670_vm14 = vmand %vm596_vm15, %vm3825_vm3  ;;  %v292_v42 = vrot.slane %v288_v15, %v2188_v7  ;;  %v296_v43 = vrot.slane %v288_v15, %v2190_v8 }
 0x379   : > { %vm284_vm5 = vcmp.lt.s32.totalorder %v2193_v10, 17  ;;  %v671_v47 = vsel %vm670_vm14, 1, %v3830_v0  ;;  %vm2757_vm14 = vcmp.eq.s32.totalorder %v322_v55, 1 }
 0x37a   : > { %v661_v35 = vadd.f32 %v659_v33, %v628_v21  ;;  %v662_v28 = vadd.f32 %v660_v34, %v629_v32  ;;  %vm2747_vm15 = vcmp.eq.s32.totalorder %v292_v42, 1  ;;  %vm2751_vm10 = vcmp.eq.s32.totalorder %v296_v43, 1 }
 0x37b   : > { %v675_v9 = vrot.slane %v671_v47, %v2188_v7  ;;  %v679_v11 = vrot.slane %v671_v47, %v2190_v8 }
 0x37d   : > { %vm2774_vm2 = vcmp.eq.s32.totalorder %v675_v9, 1  ;;  %vm2778_vm6 = vcmp.eq.s32.totalorder %v679_v11, 1 }
 0x382   : > { %v2724_v29 = vpop.permute.xlu0 %719  ;;  %v2726_v38 = vpop.permute.xlu1 %367 }
 0x386   : > { %v2734_v53 = vpop.permute.xlu0 %1451  ;;  %v2736_v39 = vpop.permute.xlu1 %1083 }
 0x38a   : > { %v281_v59 = vpop.permute.xlu0 %280  ;;  %v279_v4 = vpop.permute.xlu1 %278 }
 0x38b   : > { %v285_v5 = vsel %vm284_vm5, %v279_v4, %v281_v59  ;;  %v286_v6 = vsel %vm284_vm5, %v281_v59, %v279_v4  ;;  %vm667_vm5 = vcmp.lt.s32.totalorder %v2193_v10, 30 }
 0x38c   : > { %v299_v18 = vsel %vm2747_vm15, %v286_v6, 0.0  ;;  %v300_v19 = vsel %vm2751_vm10, %v285_v5, 0.0  ;;  %vm949_vm15 = vcmp.ge.s32.totalorder %v2378_v54, 4  ;;  %vm951_vm10 = vcmp.ge.s32.totalorder %v2185_v3, 4 }
 0x38d   : > { %v307_v20 = vmul.f32 %v2543_v56, %v299_v18  ;;  %v308_v21 = vmul.f32 %v2543_v56, %v300_v19  ;;  %v272_v18 = vand.u32 4, %v2378_v54 }
 0x38e   : > { %v314_v22 = vpop.permute.xlu0 %313  ;;  %v312_v23 = vpop.permute.xlu1 %311 }
 0x38f   : > { %v316_v24 = vsel %vm315_vm0, %v312_v23, %v314_v22  ;;  %v317_v25 = vsel %vm315_vm0, %v314_v22, %v312_v23  ;;  %vm960_vm0 = vmand %vm949_vm15, %vm951_vm10 }
 0x390   : > { %v329_v17 = vsel %vm2757_vm14, %v317_v25, 0.0  ;;  %v330_v31 = vsel %vm2761_vm9, %v316_v24, 0.0  ;;  %vm952_vm9 = vcmp.lt.s32.totalorder %v2185_v3, 12  ;;  %v961_v5 = vsel %vm960_vm0, 1, %v3830_v0 }
 0x391   : > { %v338_v32 = vmul.f32 %v2557_v61, %v329_v17  ;;  %v339_v33 = vmul.f32 %v2557_v61, %v330_v31  ;;  %v965_v9 = vrot.slane %v961_v5, %v2188_v7  ;;  %v1055_v31 = vsel %vm951_vm10, 1, %v3830_v0 }
 0x392   : > { %v666_v34 = vpop.permute.xlu0 %665  ;;  %v664_v15 = vpop.permute.xlu1 %663  ;;  %vm277_vm0 = vcmp.lt.s32.totalorder %v2185_v3, 15 }
 0x393   : > { %v2792_v42 = vadd.f32 %v338_v32, %v307_v20  ;;  %v2794_v43 = vadd.f32 %v339_v33, %v308_v21  ;;  %v668_v46 = vsel %vm667_vm5, %v664_v15, %v666_v34  ;;  %v669_v47 = vsel %vm667_vm5, %v666_v34, %v664_v15 }
 0x394   : > { %v682_v55 = vsel %vm2774_vm2, %v669_v47, 0.0  ;;  %v683_v56 = vsel %vm2778_vm6, %v668_v46, 0.0  ;;  %vm1023_vm2 = vmand %vm949_vm15, %vm952_vm9  ;;  %vm957_vm6 = vcmp.lt.s32.totalorder %v2193_v10, 68  ;;  %vm2838_vm14 = vcmp.eq.s32.totalorder %v965_v9, 1 }
 0x395   : > { %v691_v61 = vmul.f32 %v2555_v60, %v682_v55  ;;  %v692_v58 = vmul.f32 %v2555_v60, %v683_v56  ;;  %v1024_v11 = vsel %vm1023_vm2, 1, %v3830_v0  ;;  %v1063_v9 = vrot.slane %v1055_v31, %v2190_v8 }
 0x396   : > { %v2811_v59 = vpop.permute.xlu0 %730  ;;  %v2813_v62 = vpop.permute.xlu1 %398  ;;  %v1028_v24 = vrot.slane %v1024_v11, %v2188_v7  ;;  %v1032_v17 = vrot.slane %v1024_v11, %v2190_v8 }
 0x397   : > { %v2815_v63 = vadd.f32 %v691_v61, %v661_v35  ;;  %v2817_v4 = vadd.f32 %v692_v58, %v662_v28  ;;  %v992_v35 = vsel %vm949_vm15, 1, %v3830_v0  ;;  %v969_v28 = vrot.slane %v961_v5, %v2190_v8 }
 0x398   : > { %v996_v12 = vrot.slane %v992_v35, %v2188_v7  ;;  %v1000_v13 = vrot.slane %v992_v35, %v2190_v8  ;;  %vm989_vm15 = vcmp.lt.s32.totalorder %v2193_v10, 64  ;;  %vm2872_vm1 = vcmp.eq.s32.totalorder %v1028_v24, 1 }
 0x399   : > { %vm2843_vm5 = vcmp.eq.s32.totalorder %v969_v28, 1  ;;  %v1059_v61 = vrot.slane %v1055_v31, %v2188_v7 }
 0x39a   : > { %v2824_v6 = vpop.permute.xlu0 %1476  ;;  %v2826_v60 = vpop.permute.xlu1 %1114  ;;  %vm2857_vm2 = vcmp.eq.s32.totalorder %v996_v12, 1  ;;  %vm2861_vm3 = vcmp.eq.s32.totalorder %v1000_v13, 1 }
 0x39e   : > { %v954_v19 = vpop.permute.xlu0 %953  ;;  %v956_v23 = vpop.permute.xlu1 %955 }
 0x39f   : > { %v2847_v30 = vsel %vm957_vm6, %v954_v19, %v956_v23  ;;  %v2849_v14 = vsel %vm957_vm6, %v956_v23, %v954_v19  ;;  %vm273_vm6 = vcmp.eq.s32.totalorder %v272_v18, 0 }
 0x3a0   : > { %v972_v32 = vsel %vm2838_vm14, %v2849_v14, 0.0  ;;  %v973_v33 = vsel %vm2843_vm5, %v2847_v30, 0.0  ;;  %vm2884_vm14 = vcmp.eq.s32.totalorder %v1032_v17, 1  ;;  %vm349_vm5 = vmand %vm274_vm8, %vm277_vm0  ;;  %v1292_v35 = vsel %vm273_vm6, 1, %v3830_v0 }
 0x3a1   : > { %v981_v28 = vmul.f32 %v2520_v49, %v972_v32  ;;  %v982_v11 = vmul.f32 %v2520_v49, %v973_v33  ;;  %v350_v22 = vsel %vm349_vm5, 1, %v3830_v0  ;;  %v1296_v31 = vrot.slane %v1292_v35, %v2188_v7 }
 0x3a2   : > { %v986_v34 = vpop.permute.xlu0 %985  ;;  %v988_v15 = vpop.permute.xlu1 %987  ;;  %v1300_v20 = vrot.slane %v1292_v35, %v2190_v8  ;;  %vm1064_vm8 = vcmp.eq.s32.totalorder %v1059_v61, 1  ;;  %v358_v46 = vrot.slane %v350_v22, %v2190_v8 }
 0x3a3   : > { %v2878_v47 = vsel %vm989_vm15, %v986_v34, %v988_v15  ;;  %v2882_v55 = vsel %vm989_vm15, %v988_v15, %v986_v34  ;;  %v354_v15 = vrot.slane %v350_v22, %v2188_v7 }
 0x3a4   : > { %v1003_v58 = vsel %vm2857_vm2, %v2882_v55, 0.0  ;;  %v1004_v5 = vsel %vm2861_vm3, %v2878_v47, 0.0  ;;  %vm1065_vm3 = vcmp.eq.s32.totalorder %v1063_v9, 1  ;;  %vm346_vm2 = vcmp.lt.s32.totalorder %v2193_v10, 15 }
 0x3a5   : > { %v1012_v12 = vmul.f32 %v2518_v48, %v1003_v58  ;;  %v1013_v13 = vmul.f32 %v2518_v48, %v1004_v5  ;;  %vm2952_vm6 = vcmp.eq.s32.totalorder %v358_v46, 1 }
 0x3a6   : > { %v1019_v18 = vpop.permute.xlu0 %1018  ;;  %v1017_v19 = vpop.permute.xlu1 %1016 }
 0x3a7   : > { %v1014_v23 = vadd.f32 %v1012_v12, %v981_v28  ;;  %v1015_v24 = vadd.f32 %v1013_v13, %v982_v11  ;;  %v2908_v25 = vsel %vm1020_vm12, %v1017_v19, %v1019_v18  ;;  %v2912_v17 = vsel %vm1020_vm12, %v1019_v18, %v1017_v19 }
 0x3a8   : > { %v1035_v49 = vsel %vm2872_vm1, %v2912_v17, 0.0  ;;  %v1036_v48 = vsel %vm2884_vm14, %v2908_v25, 0.0  ;;  %vm2930_vm1 = vcmp.eq.s32.totalorder %v1296_v31, 1  ;;  %vm2934_vm12 = vcmp.eq.s32.totalorder %v1300_v20, 1 }
 0x3a9   : > { %v1044_v21 = vmul.f32 %v2534_v52, %v1035_v49  ;;  %v1045_v32 = vmul.f32 %v2534_v52, %v1036_v48  ;;  %v702_v13 = vsel %vm598_vm4, 1, %v3830_v0  ;;  %v1086_v18 = vmul.f32 %v2736_v39, %v2591_v26 }
 0x3aa   : > { %v1051_v33 = vpop.permute.xlu0 %1050  ;;  %v1049_v34 = vpop.permute.xlu1 %1048  ;;  %v1087_v19 = vmul.f32 %v2736_v39, %v2594_v27  ;;  %v706_v20 = vrot.slane %v702_v13, %v2188_v7 }
 0x3ab   : > { %v1046_v58 = vadd.f32 %v1044_v21, %v1014_v23  ;;  %v1047_v5 = vadd.f32 %v1045_v32, %v1015_v24  ;;  %v1053_v56 = vsel %vm1052_vm11, %v1049_v34, %v1051_v33  ;;  %v1054_v35 = vsel %vm1052_vm11, %v1051_v33, %v1049_v34 }
 0x3ac   : > { %v1066_v28 = vsel %vm1064_vm8, %v1054_v35, 0.0  ;;  %v1067_v11 = vsel %vm1065_vm3, %v1053_v56, 0.0  ;;  %vm2948_vm11 = vcmp.eq.s32.totalorder %v354_v15, 1  ;;  %v710_v21 = vrot.slane %v702_v13, %v2190_v8 }
 0x3ad   : > { %v1075_v9 = vmul.f32 %v2695_v2, %v1066_v28  ;;  %v1076_v12 = vmul.f32 %v2695_v2, %v1067_v11  ;;  %vm3886_vm3 = vcmp.lt.s32.totalorder %v2193_v10, 1 }
 0x3ae   : > { %v1287_v22 = vpop.permute.xlu0 %1286  ;;  %v1289_v23 = vpop.permute.xlu1 %1288  ;;  %vm712_vm14 = vcmp.eq.s32.totalorder %v710_v21, 1 }
 0x3af   : > { %v1077_v49 = vadd.f32 %v1075_v9, %v1046_v58  ;;  %v1078_v48 = vadd.f32 %v1076_v12, %v1047_v5  ;;  %v1290_v31 = vsel %vm989_vm15, %v1287_v22, %v1289_v23  ;;  %v1291_v26 = vsel %vm989_vm15, %v1289_v23, %v1287_v22 }
 0x3b0   : > { %v1303_v27 = vsel %vm2930_vm1, %v1290_v31, %v1291_v26  ;;  %v1304_v39 = vsel %vm2934_vm12, %v1291_v26, %v1290_v31  ;;  %vm711_vm15 = vcmp.eq.s32.totalorder %v706_v20, 1  ;;  %v734_v22 = vmul.f32 %v2811_v59, %v2496_v41  ;;  %vm3887_vm1 = vmmov %vm3886_vm3 }
 0x3b1   : > { %v2967_v32 = vmax.f32 %v2619_v36, %v1303_v27  ;;  %v2970_v33 = vmax.f32 %v2622_v37, %v1304_v39  ;;  %v2972_v34 = vadd.f32 %v1086_v18, %v1077_v49  ;;  %v2974_v15 = vadd.f32 %v1087_v19, %v1078_v48 }
 0x3b2   : > { %v345_v46 = vpop.permute.xlu0 %344  ;;  %v343_v58 = vpop.permute.xlu1 %342  ;;  %v1097_v20 = vsel %vm952_vm9, 1, %v3830_v0 }
 0x3b3   : > { %v347_v5 = vsel %vm346_vm2, %v343_v58, %v345_v46  ;;  %v348_v56 = vsel %vm346_vm2, %v345_v46, %v343_v58  ;;  %1313 = vrot.lane.b32.xlu1 %v2970_v33, %s2115_s18  ;;  %1311 = vrot.lane.b32.xlu0 %v2967_v32, %s2115_s18 }
 0x3b4   : > { %v361_v36 = vsel %vm2948_vm11, %v348_v56, 0.0  ;;  %v362_v37 = vsel %vm2952_vm6, %v347_v5, 0.0  ;;  %v1101_v56 = vrot.slane %v1097_v20, %v2188_v7 }
 0x3b5   : > { %v370_v35 = vmul.f32 %v2726_v38, %v361_v36  ;;  %v371_v28 = vmul.f32 %v2726_v38, %v362_v37  ;;  %v1105_v36 = vrot.slane %v1097_v20, %v2190_v8 }
 0x3b6   : > { %v698_v11 = vpop.permute.xlu0 %697  ;;  %v696_v52 = vpop.permute.xlu1 %695  ;;  %vm3075_vm2 = vcmp.eq.s32.totalorder %v1101_v56, 1 }
 0x3b7   : > { %v2989_v61 = vadd.f32 %v370_v35, %v2792_v42  ;;  %v2992_v9 = vadd.f32 %v371_v28, %v2794_v43  ;;  %v700_v12 = vsel %vm699_vm7, %v696_v52, %v698_v11  ;;  %v701_v13 = vsel %vm699_vm7, %v698_v11, %v696_v52  ;;  %1369 = vrot.lane.b32.xlu1 %v2970_v33, %s2116_s16 }
 0x3b8   : > { %v713_v38 = vsel %vm711_vm15, %v701_v13, 0.0  ;;  %v714_v18 = vsel %vm712_vm14, %v700_v12, 0.0  ;;  %1367 = vrot.lane.b32.xlu0 %v2967_v32, %s2116_s16  ;;  %v733_v43 = vmul.f32 %v2811_v59, %v2493_v40  ;;  %vm950_vm7 = vcmp.lt.s32.totalorder %v2378_v54, 12 }
 0x3b9   : > { %v722_v19 = vmul.f32 %v2724_v29, %v713_v38  ;;  %v723_v42 = vmul.f32 %v2724_v29, %v714_v18  ;;  %v1965_v29 = vld [vmem:[%s3817_s3 + $0x40] sm:$0xff]  ;;  %vm1121_vm5 = vmand %vm950_vm7, %vm951_vm10  ;;  %v1146_v46 = vsel %vm950_vm7, 1, %v3830_v0  ;;  %vm3079_vm11 = vcmp.eq.s32.totalorder %v1105_v36, 1 }
 0x3ba   : > { %v1122_v48 = vsel %vm1121_vm5, 1, %v3830_v0  ;;  %vm3896_vm15 = vcmp.lt.s32.totalorder %v2193_v10, 124  ;;  %v3828_v12 = vmov 0.0  }
 0x3bb   : > { %v724_v23 = vadd.f32 %v722_v19, %v2815_v63  ;;  %v725_v24 = vadd.f32 %v723_v42, %v2817_v4  ;;  %449 = vrot.lane.b32.xlu1 %v2523_v50, %s2114_s17  ;;  %v381_v4 = vsel %vm276_vm13, 1, %v3830_v0  ;;  %v1126_v21 = vrot.slane %v1122_v48, %v2188_v7  ;;  %vm3897_vm14 = vmmov %vm3896_vm15  ;;  %1637 = vmatprep.mubr.f32.mxu0 %v3828_v12 }
 0x3bc   : > { %800 = vrot.lane.b32.xlu0 %v2493_v40, %s2104_s15  ;;  %v385_v31 = vrot.slane %v381_v4, %v2188_v7  ;;  %v389_v26 = vrot.slane %v381_v4, %v2190_v8  ;;  %v1130_v37 = vrot.slane %v1122_v48, %v2190_v8  ;;  %1649 = vmatprep.mubr.f32.mxu1 %v3828_v12 }
 0x3bd   : > { %v3016_v2 = vadd.f32 %v733_v43, %v724_v23  ;;  %v3018_v49 = vadd.f32 %v734_v22, %v725_v24  ;;  %vm3064_vm12 = vcmp.eq.s32.totalorder %v1126_v21, 1 }
 0x3be   : > { %vm3047_vm10 = vcmp.eq.s32.totalorder %v385_v31, 1  ;;  %vm3051_vm8 = vcmp.eq.s32.totalorder %v389_v26, 1  ;;  %vm3085_vm6 = vcmp.eq.s32.totalorder %v1130_v37, 1  ;;  %v1536_v26 = vld [vmem:[%s3819_s5] sm:$0xff] }
 0x3bf   : > { %v3020_v59 = vpop.permute.xlu0 %761  ;;  %802 = vrot.lane.b32.xlu1 %v2496_v41, %s2104_s15  ;;  %v410_v63 = vpop.permute.xlu1 %409  ;;  %s2118_s15 = smov 111   ;;  %v1134_v5 = vsel %vm3085_vm6, %v2849_v14, 0.0  ;;  %v1538_v14 = vld [vmem:[%s3819_s5 + $0x10] sm:$0xff] }
 0x3c0   : > { %535 = vperm.xlu0 %2043, %v1965_v29   ;;  %v412_v43 = vmul.f32 %v410_v63, %v2526_v51  ;;  %v413_v22 = vmul.f32 %v410_v63, %v2523_v50  ;;  %v1154_v29 = vrot.slane %v1146_v46, %v2190_v8 }
 0x3c3   : > { %v3034_v27 = vpop.permute.xlu0 %1500  ;;  %479 = vrot.lane.b32.xlu1 %v2526_v51, %s2102_s11  ;;  %v1140_v39 = vpop.permute.xlu1 %1139 }
 0x3c4   : > { %481 = vrot.lane.b32.xlu0 %v2523_v50, %s2102_s11  ;;  %s2117_s11 = smov 94  }
 0x3c7   : > { %v377_v35 = vpop.permute.xlu0 %376  ;;  %831 = vrot.lane.b32.xlu1 %v2493_v40, %s2117_s11  ;;  %v375_v28 = vpop.permute.xlu1 %374  ;;  %v1150_v40 = vrot.slane %v1146_v46, %v2188_v7 }
 0x3c8   : > { %833 = vrot.lane.b32.xlu0 %v2496_v41, %s2117_s11  ;;  %v379_v11 = vsel %vm3886_vm3, %v375_v28, %v377_v35  ;;  %v380_v52 = vsel %vm3887_vm1, %v377_v35, %v375_v28  ;;  %v1143_v28 = vmul.f32 %v1140_v39, %v1134_v5  ;;  %vm1170_vm3 = vmand %vm950_vm7, %vm952_vm9  ;;  %vm3903_vm1 = vcmp.lt.s32.totalorder %v2193_v10, 126 }
 0x3c9   : > { %v392_v13 = vsel %vm3047_vm10, %v380_v52, 0.0  ;;  %v393_v38 = vsel %vm3051_vm8, %v379_v11, 0.0  ;;  %vm3111_vm5 = vcmp.eq.s32.totalorder %v1150_v40, 1  ;;  %vm3900_vm10 = vcmp.lt.s32.totalorder %v2185_v3, 14 }
 0x3ca   : > { %v401_v41 = vmul.f32 %v2813_v62, %v392_v13  ;;  %v402_v18 = vmul.f32 %v2813_v62, %v393_v38  ;;  %v744_v35 = vsel %vm3900_vm10, 1, %v3830_v0  ;;  %vm3136_vm8 = vcmp.eq.s32.totalorder %v1154_v29, 1 }
 0x3cb   : > { %v1093_v24 = vpop.permute.xlu0 %1092  ;;  %510 = vrot.lane.b32.xlu1 %v2526_v51, %s2118_s15  ;;  %v1091_v62 = vpop.permute.xlu1 %1090  ;;  %v1133_v51 = vsel %vm3064_vm12, %v2847_v30, 0.0  ;;  %v748_v13 = vrot.slane %v744_v35, %v2188_v7  ;;  %v752_v38 = vrot.slane %v744_v35, %v2190_v8  ;;  %vm3904_vm12 = vmmov %vm3903_vm1 }
 0x3cc   : > { %v403_v4 = vadd.f32 %v401_v41, %v2989_v61  ;;  %v404_v48 = vadd.f32 %v402_v18, %v2992_v9  ;;  %512 = vrot.lane.b32.xlu0 %v2523_v50, %s2118_s15  ;;  %v1095_v63 = vsel %vm3896_vm15, %v1091_v62, %v1093_v24  ;;  %v1096_v31 = vsel %vm3897_vm14, %v1093_v24, %v1091_v62  ;;  %v1537_v9 = vld [vmem:[%s3819_s5 + $0x8] sm:$0xff] }
 0x3cd   : > { %v1108_v61 = vsel %vm3075_vm2, %v1095_v63, 0.0  ;;  %v1109_v50 = vsel %vm3079_vm11, %v1096_v31, 0.0  ;;  %v1142_v56 = vmul.f32 %v1140_v39, %v1133_v51  ;;  %v1539_v39 = vld [vmem:[%s3819_s5 + $0x18] sm:$0xff]  ;;  %v1157_v41 = vsel %vm3111_vm5, %v2878_v47, 0.0 }
 0x3ce   : > { %v1117_v21 = vmul.f32 %v2826_v60, %v1108_v61  ;;  %v1118_v46 = vmul.f32 %v2826_v60, %v1109_v50  ;;  %v3117_v58 = vadd.f32 %v412_v43, %v403_v4  ;;  %v3119_v30 = vadd.f32 %v413_v22, %v404_v48 }
 0x3cf   : > { %v3124_v36 = vpop.permute.xlu0 %793  ;;  %1542 = vperm.xlu1 %2044, %v1536_v26   ;;  %v3126_v37 = vpop.permute.xlu1 %440  ;;  %v1158_v18 = vsel %vm3136_vm8, %v2882_v55, 0.0  ;;  %v1171_v22 = vsel %vm1170_vm3, 1, %v3830_v0  ;;  %vm753_vm9 = vcmp.eq.s32.totalorder %v748_v13, 1  ;;  %vm754_vm7 = vcmp.eq.s32.totalorder %v752_v38, 1 }
 0x3d0   : > { %v1119_v60 = vadd.f32 %v1117_v21, %v2972_v34  ;;  %v1120_v11 = vadd.f32 %v1118_v46, %v2974_v15  ;;  %1547 = vperm.xlu0 %2043, %v1537_v9   ;;  %v1175_v55 = vrot.slane %v1171_v22, %v2188_v7  ;;  %v1179_v4 = vrot.slane %v1171_v22, %v2190_v8 }
 0x3d2   : > { %v1144_v34 = vadd.f32 %v1142_v56, %v1119_v60  ;;  %v1145_v15 = vadd.f32 %v1143_v28, %v1120_v11  ;;  %vm1180_vm2 = vcmp.eq.s32.totalorder %v1175_v55, 1  ;;  %vm1181_vm11 = vcmp.eq.s32.totalorder %v1179_v4, 1  ;;  %v2078_v28 = vld [vmem:[%s3816_s2] sm:$0x3] }
 0x3d3   : > { %v3151_v40 = vpop.permute.xlu0 %1525  ;;  %1552 = vperm.xlu1 %2044, %v1538_v14   ;;  %v1164_v19 = vpop.permute.xlu1 %1163  ;;  %v1182_v9 = vsel %vm1180_vm2, %v2908_v25, 0.0  ;;  %v1183_v20 = vsel %vm1181_vm11, %v2912_v17, 0.0  ;;  %vm1309_vm15 = vcmp.ge.s32.totalorder %v2078_v28, 8  ;;  %vm1310_vm3 = vcmp.lt.s32.totalorder %v2078_v28, 8 }
 0x3d4   : > { %1557 = vperm.xlu0 %2043, %v1539_v39   ;;  %v1166_v42 = vmul.f32 %v1164_v19, %v1157_v41  ;;  %v1167_v43 = vmul.f32 %v1164_v19, %v1158_v18  ;;  %v1399_v38 = vsel %vm1309_vm15, 1, %v3830_v0  ;;  %v3233_v41 = vsel %vm277_vm0, 1, %v3830_v0 }
 0x3d5   : > { %vm1315_vm2 = vcmp.lt.s32.totalorder %v2193_v10, 8 }
 0x3d6   : > { %v1168_v23 = vadd.f32 %v1166_v42, %v1144_v34  ;;  %v1169_v54 = vadd.f32 %v1167_v43, %v1145_v15 }
 0x3d7   : > { %v740_v24 = vpop.permute.xlu0 %739  ;;  %v738_v62 = vpop.permute.xlu1 %737 }
 0x3d8   : > { %v742_v29 = vsel %vm3903_vm1, %v738_v62, %v740_v24  ;;  %v743_v47 = vsel %vm3904_vm12, %v740_v24, %v738_v62  ;;  %v1407_v24 = vrot.slane %v1399_v38, %v2190_v8 }
 0x3d9   : > { %v755_v48 = vsel %vm753_vm9, %v742_v29, 0.0  ;;  %v756_v63 = vsel %vm754_vm7, %v743_v47, 0.0 }
 0x3da   : > { %v764_v31 = vmul.f32 %v3020_v59, %v755_v48  ;;  %v765_v26 = vmul.f32 %v3020_v59, %v756_v63 }
 0x3db   : > { %v3168_v51 = vpop.permute.xlu1 %472  ;;  %v3182_v35 = vpop.permute.xlu0 %824 }
 0x3dc   : > { %v3171_v61 = vadd.f32 %v764_v31, %v3016_v2  ;;  %v3174_v50 = vadd.f32 %v765_v26, %v3018_v49  ;;  %v3189_v49 = vld [vmem:[%s3815_s1] sm:$0x3] }
 0x3dd   : > { %vm1308_vm6 = vcmp.lt.s32.totalorder %v3189_v49, 8  ;;  %vm1307_vm14 = vcmp.ge.s32.totalorder %v3189_v49, 8  ;;  %vm597_vm5 = vcmp.lt.s32.totalorder %v3189_v49, 14 }
 0x3de   : > { %v3203_v60 = vsel %vm1308_vm6, 1, %v3830_v0  ;;  %vm1318_vm10 = vmand %vm1307_vm14, %vm1309_vm15  ;;  %v1343_v11 = vsel %vm1307_vm14, 1, %v3830_v0  ;;  %v807_v31 = vsel %vm597_vm5, 1, %v3830_v0 }
 0x3df   : > { %v1189_v21 = vpop.permute.xlu1 %1188  ;;  %v3184_v2 = vpop.permute.xlu0 %416  ;;  %v1487_v14 = vrot.slane %v3203_v60, %v2188_v7  ;;  %vm775_vm8 = vmand %vm597_vm5, %vm598_vm4  ;;  %v1319_v34 = vsel %vm1318_vm10, 1, %v3830_v0  ;;  %v1347_v15 = vrot.slane %v1343_v11, %v2188_v7  ;;  %v1351_v13 = vrot.slane %v1343_v11, %v2190_v8 }
 0x3e0   : > { %v1191_v46 = vmul.f32 %v1189_v21, %v1182_v9  ;;  %v1192_v5 = vmul.f32 %v1189_v21, %v1183_v20  ;;  %vm1458_vm9 = vmand %vm1308_vm6, %vm1309_vm15  ;;  %v1491_v18 = vrot.slane %v3203_v60, %v2190_v8  ;;  %v3242_v42 = vsel %vm775_vm8, 1, %v3830_v0 }
 0x3e1   : > { %vm3237_vm4 = vcmp.eq.s32.totalorder %v1487_v14, 1  ;;  %v1323_v22 = vrot.slane %v1319_v34, %v2188_v7  ;;  %vm1374_vm7 = vmand %vm1307_vm14, %vm1310_vm3  ;;  %v1459_v62 = vsel %vm1458_vm9, 1, %v3830_v0  ;;  %vm3260_vm1 = vcmp.eq.s32.totalorder %v1347_v15, 1 }
 0x3e2   : > { %v3178_v56 = vadd.f32 %v1191_v46, %v1168_v23  ;;  %v3180_v59 = vadd.f32 %v1192_v5, %v1169_v54  ;;  %v1327_v23 = vrot.slane %v1319_v34, %v2190_v8  ;;  %v1403_v54 = vrot.slane %v1399_v38, %v2188_v7  ;;  %vm3297_vm8 = vmand %vm1308_vm6, %vm1310_vm3 }
 0x3e3   : > { %v3192_v25 = vpop.permute.xlu0 %768  ;;  %v3194_v17 = vpop.permute.xlu1 %418  ;;  %vm3264_vm12 = vcmp.eq.s32.totalorder %v1351_v13, 1  ;;  %v1375_v26 = vsel %vm1374_vm7, 1, %v3830_v0  ;;  %vm3274_vm11 = vcmp.eq.s32.totalorder %v1323_v22, 1  ;;  %v1463_v20 = vrot.slane %v1459_v62, %v2188_v7 }
 0x3e4   : > { %v1467_v21 = vrot.slane %v1459_v62, %v2190_v8  ;;  %v1434_v46 = vsel %vm1310_vm3, 1, %v3830_v0  ;;  %vm3282_vm15 = vcmp.eq.s32.totalorder %v1327_v23, 1  ;;  %vm3286_vm14 = vcmp.eq.s32.totalorder %v1403_v54, 1 }
 0x3e5   : > { %vm3290_vm10 = vcmp.eq.s32.totalorder %v1407_v24, 1  ;;  %vm275_vm9 = vcmp.lt.s32.totalorder %v3189_v49, 15  ;;  %v1354_v15 = vsel %vm3260_vm1, %v2970_v33, 0.0  ;;  %v1355_v13 = vsel %vm3264_vm12, %v2967_v32, 0.0 }
 0x3e6   : > { %v1379_v28 = vrot.slane %v1375_v26, %v2188_v7  ;;  %v1383_v22 = vrot.slane %v1375_v26, %v2190_v8  ;;  %v1438_v24 = vrot.slane %v1434_v46, %v2188_v7  ;;  %v1442_v62 = vrot.slane %v1434_v46, %v2190_v8  ;;  %vm454_vm1 = vmand %vm275_vm9, %vm276_vm13 }
 0x3e7   : > { %v3214_v52 = vpop.permute.xlu0 %503  ;;  %v3216_v39 = vpop.permute.xlu1 %770  ;;  %vm3320_vm6 = vcmp.eq.s32.totalorder %v1463_v20, 1  ;;  %vm3324_vm3 = vcmp.eq.s32.totalorder %v1467_v21, 1  ;;  %v1508_v46 = vsel %vm3297_vm8, 1, %v3830_v0  ;;  %v1363_v21 = vmul.f32 %v2510_v45, %v1354_v15 }
 0x3e8   : > { %3905 = vst [vmem:[#allocation2_spill] sm:$0xff] %v3214_v52  ;;  %vm1371_vm7 = vcmp.lt.s32.totalorder %v2193_v10, 120  ;;  %vm3347_vm12 = vcmp.eq.s32.totalorder %v1491_v18, 1  ;;  %v1430_v18 = vmul.f32 %v2693_v1, %v2967_v32  ;;  %vm3363_vm13 = vcmp.eq.s32.totalorder %v1438_v24, 1 }
 0x3e9   : > { %v1431_v11 = vmul.f32 %v2693_v1, %v2970_v33 }
 0x3eb   : > { %v3244_v43 = vpop.permute.xlu0 %447  ;;  %v3258_v55 = vpop.permute.xlu1 %856 }
 0x3ec   : > { %3908 = vst [vmem:[#allocation3_spill] sm:$0xff] %v3258_v55  ;;  %v3937_v55 = vmov 0  }
 0x425   : > { %v1312_v34 = vpop.permute.xlu0 %1311  ;;  %v1314_v38 = vpop.permute.xlu1 %1313 }
 0x426   : > { %v3312_v23 = vsel %vm1315_vm2, %v1312_v34, %v1314_v38  ;;  %v3316_v54 = vsel %vm1315_vm2, %v1314_v38, %v1312_v34  ;;  %v1364_v38 = vmul.f32 %v2510_v45, %v1355_v13  ;;  %vm3353_vm2 = vcmp.eq.s32.totalorder %v1379_v28, 1 }
 0x427   : > { %v1330_v26 = vsel %vm3274_vm11, %v3312_v23, 0.0  ;;  %v1331_v34 = vsel %vm3282_vm15, %v3316_v54, 0.0  ;;  %vm3357_vm11 = vcmp.eq.s32.totalorder %v1383_v22, 1  ;;  %vm3367_vm15 = vcmp.eq.s32.totalorder %v1442_v62, 1 }
 0x428   : > { %v1339_v5 = vmul.f32 %v2508_v44, %v1330_v26  ;;  %v1340_v14 = vmul.f32 %v2508_v44, %v1331_v34  ;;  %v1512_v44 = vrot.slane %v1508_v46, %v2188_v7  ;;  %v455_v34 = vsel %vm454_vm1, 1, %v3830_v0 }
 0x429   : > { %v1370_v15 = vpop.permute.xlu1 %1369  ;;  %v1410_v24 = vsel %vm3286_vm14, %v3316_v54, 0.0  ;;  %v1411_v62 = vsel %vm3290_vm10, %v3312_v23, 0.0  ;;  %v1516_v0 = vrot.slane %v1508_v46, %v2190_v8  ;;  %v459_v12 = vrot.slane %v455_v34, %v2188_v7 }
 0x42a   : > { %v1368_v13 = vpop.permute.xlu0 %1367  ;;  %v1366_v47 = vadd.f32 %v1364_v38, %v1340_v14  ;;  %v486_v45 = vsel %vm275_vm9, 1, %v3937_v55  ;;  %v1419_v52 = vmul.f32 %v2545_v57, %v1410_v24  ;;  %v3947_v26 = vrot.slane %v3242_v42, %v2190_v8 }
 0x42b   : > { %v3372_v28 = vsel %vm1371_vm7, %v1368_v13, %v1370_v15  ;;  %v3374_v22 = vsel %vm1371_vm7, %v1370_v15, %v1368_v13  ;;  %v1365_v13 = vadd.f32 %v1363_v21, %v1339_v5  ;;  %v1420_v21 = vmul.f32 %v2545_v57, %v1411_v62 }
 0x42c   : > { %v1386_v63 = vsel %vm3353_vm2, %v3374_v22, 0.0  ;;  %v1387_v15 = vsel %vm3357_vm11, %v3372_v28, 0.0  ;;  %v1445_v46 = vsel %vm3363_vm13, %v3372_v28, 0.0  ;;  %v1446_v14 = vsel %vm3367_vm15, %v3374_v22, 0.0 }
 0x42d   : > { %v1395_v29 = vmul.f32 %v2530_v16, %v1386_v63  ;;  %v1396_v60 = vmul.f32 %v2530_v16, %v1387_v15  ;;  %v3404_v63 = vpop.permute.xlu1 %449  ;;  %v3938_v16 = vrot.slane %v3233_v41, %v2188_v7  ;;  %v811_v57 = vrot.slane %v807_v31, %v2188_v7 }
 0x42e   : > { %v3944_v62 = vrot.slane %v3242_v42, %v2188_v7  ;;  %vm3438_vm1 = vcmp.eq.s32.totalorder %v3947_v26, 1  ;;  %vm3442_vm2 = vcmp.eq.s32.totalorder %v1512_v44, 1  ;;  %v1471_v42 = vsel %vm3324_vm3, %v3316_v54, 0.0 }
 0x42f   : > { %v1397_v38 = vadd.f32 %v1395_v29, %v1365_v13  ;;  %v1398_v5 = vadd.f32 %v1396_v60, %v1366_v47  ;;  %vm3409_vm14 = vcmp.eq.s32.totalorder %v3938_v16, 1  ;;  %v815_v29 = vrot.slane %v807_v31, %v2190_v8 }
 0x430   : > { %v3941_v47 = vrot.slane %v3233_v41, %v2190_v8  ;;  %vm3431_vm7 = vcmp.eq.s32.totalorder %v3944_v62, 1  ;;  %v463_v60 = vrot.slane %v455_v34, %v2190_v8  ;;  %v1470_v16 = vsel %vm3320_vm6, %v3312_v23, 0.0 }
 0x431   : > { %v1421_v31 = vadd.f32 %v1419_v52, %v1397_v38  ;;  %v1422_v13 = vadd.f32 %v1420_v21, %v1398_v5  ;;  %vm3453_vm11 = vcmp.eq.s32.totalorder %v1516_v0, 1  ;;  %v490_v44 = vrot.slane %v486_v45, %v2188_v7  ;;  %v803_v21 = vpop.permute.xlu1 %802 }
 0x432   : > { %vm3424_vm10 = vcmp.eq.s32.totalorder %v3941_v47, 1  ;;  %v1454_v52 = vmul.f32 %v2734_v53, %v1445_v46  ;;  %v1455_v34 = vmul.f32 %v2734_v53, %v1446_v14  ;;  %v1495_v23 = vsel %vm3347_vm12, %v2967_v32, 0.0 }
 0x433   : > { %v1432_v62 = vadd.f32 %v1430_v18, %v1421_v31  ;;  %v1433_v26 = vadd.f32 %v1431_v11, %v1422_v13  ;;  %vm3464_vm13 = vcmp.eq.s32.totalorder %v811_v57, 1  ;;  %vm3468_vm3 = vcmp.eq.s32.totalorder %v815_v29, 1  ;;  %v801_v57 = vpop.permute.xlu0 %800 }
 0x434   : > { %vm3958_vm15 = vcmp.lt.s32.totalorder %v2185_v3, 14  ;;  %v1479_v32 = vmul.f32 %v2824_v6, %v1470_v16  ;;  %v1480_v4 = vmul.f32 %v2824_v6, %v1471_v42  ;;  %vm3482_vm12 = vcmp.eq.s32.totalorder %v459_v12, 1 }
 0x435   : > { %vm3476_vm8 = vmand %vm597_vm5, %vm3958_vm15  ;;  %v1456_v48 = vadd.f32 %v1454_v52, %v1432_v62  ;;  %v1457_v9 = vadd.f32 %v1455_v34, %v1433_v26  ;;  %vm3486_vm6 = vcmp.eq.s32.totalorder %v463_v60, 1  ;;  %v3965_v38 = vsel %vm3237_vm4, %v2970_v33, 0.0 }
 0x436   : > { %v1503_v5 = vmul.f32 %v3034_v27, %v3965_v38  ;;  %v1519_v6 = vsel %vm3442_vm2, %v3374_v22, 0.0  ;;  %v1520_v12 = vsel %vm3453_vm11, %v3372_v28, 0.0  ;;  %v494_v46 = vrot.slane %v486_v45, %v2190_v8  ;;  %vm517_vm4 = vmand %vm275_vm9, %vm277_vm0 }
 0x437   : > { %v1504_v14 = vmul.f32 %v3034_v27, %v1495_v23  ;;  %v1482_v29 = vadd.f32 %v1480_v4, %v1457_v9  ;;  %v1481_v31 = vadd.f32 %v1479_v32, %v1456_v48  ;;  %vm3503_vm5 = vcmp.eq.s32.totalorder %v490_v44, 1 }
 0x438   : > { %v839_v33 = vsel %vm3476_vm8, 1, %v3937_v55  ;;  %vm3968_vm2 = vcmp.lt.s32.totalorder %v2193_v10, 127  ;;  %vm3970_vm15 = vcmp.lt.s32.totalorder %v2193_v10, 98  ;;  %v1529_v45 = vmul.f32 %v3151_v40, %v1520_v12 }
 0x439   : > { %v421_v27 = vsel %vm3968_vm2, %v3184_v2, %v3194_v17  ;;  %vm3969_vm11 = vmmov %vm3968_vm2  ;;  %v773_v22 = vsel %vm3970_vm15, %v3192_v25, %v3216_v39  ;;  %v1506_v49 = vadd.f32 %v1504_v14, %v1482_v29  ;;  %v1505_v41 = vadd.f32 %v1503_v5, %v1481_v31 }
 0x43a   : > { %v422_v28 = vsel %vm3969_vm11, %v3194_v17, %v3184_v2  ;;  %vm3971_vm8 = vmmov %vm3970_vm15  ;;  %v1528_v13 = vmul.f32 %v3151_v40, %v1519_v6  ;;  %vm3532_vm0 = vcmp.eq.s32.totalorder %v494_v46, 1  ;;  %v843_v2 = vrot.slane %v839_v33, %v2188_v7 }
 0x43b   : > { %v774_v3 = vsel %vm3971_vm8, %v3216_v39, %v3192_v25  ;;  %v847_v17 = vrot.slane %v839_v33, %v2190_v8  ;;  %v518_v16 = vsel %vm517_vm4, 1, %v3937_v55  ;;  %v434_v42 = vsel %vm3409_vm14, %v421_v27, 0.0  ;;  %v480_v39 = vpop.permute.xlu1 %479  ;;  %v3543_v47 = vpop.permute.xlu0 %535 }
 0x43c   : > { %vm3974_vm9 = vcmp.lt.s32.totalorder %v2193_v10, 96  ;;  %v1531_v40 = vadd.f32 %v1529_v45, %v1506_v49  ;;  %v1530_v44 = vadd.f32 %v1528_v13, %v1505_v41  ;;  %v435_v62 = vsel %vm3424_vm10, %v422_v28, 0.0 }
 0x43d   : > { %v805_v25 = vsel %vm3974_vm9, %v801_v57, %v803_v21  ;;  %v787_v26 = vsel %vm3431_vm7, %v773_v22, 0.0  ;;  %v788_v55 = vsel %vm3438_vm1, %v774_v3, 0.0  ;;  %vm3975_vm4 = vmmov %vm3974_vm9  ;;  %vm3976_vm14 = vcmp.lt.s32.totalorder %v2193_v10, 113 }
 0x43e   : > { %v806_v1 = vsel %vm3975_vm4, %v803_v21, %v801_v57  ;;  %v452_v52 = vsel %vm3976_vm14, %v3244_v43, %v3404_v63  ;;  %vm3977_vm2 = vmmov %vm3976_vm14  ;;  %1597 = vmatprep.subr.mxu0 %v1531_v40  ;;  %2001 = vmatprep.subr.mxu1 %v1531_v40  ;;  %vm835_vm10 = vcmp.lt.s32.totalorder %v2193_v10, 94  ;;  %v522_v20 = vrot.slane %v518_v16, %v2188_v7 }
 0x43f   : > { %v453_v24 = vsel %vm3977_vm2, %v3404_v63, %v3244_v43  ;;  %v443_v15 = vmul.f32 %v3126_v37, %v434_v42  ;;  %v818_v34 = vsel %vm3464_vm13, %v805_v25, 0.0  ;;  %1598 = vmatpush1.msra.mxu0 %v1530_v44  ;;  %2005 = vmatpush1.msra.mxu1 %v1530_v44  ;;  %vm514_vm7 = vcmp.lt.s32.totalorder %v2193_v10, 111  ;;  %v482_v32 = vpop.permute.xlu0 %481  ;;  %v832_v4 = vpop.permute.xlu1 %831 }
 0x440   : > { %v526_v23 = vrot.slane %v518_v16, %v2190_v8  ;;  %v444_v53 = vmul.f32 %v3126_v37, %v435_v62  ;;  %v796_v43 = vmul.f32 %v3124_v36, %v787_v26  ;;  %v797_v63 = vmul.f32 %v3124_v36, %v788_v55  ;;  %1599 = vmatprep.subr.mxu0 %v3180_v59  ;;  %v1532_v62 = vld [vmem:[%s3818_s4] sm:$0xff]  ;;  %v1534_v26 = vld [vmem:[%s3818_s4 + $0x10] sm:$0xff]  ;;  %v1533_v55 = vld [vmem:[%s3818_s4 + $0x8] sm:$0xff] }
 0x441   : > { %v819_v7 = vsel %vm3468_vm3, %v806_v1, 0.0  ;;  %2002 = vmatprep.subr.mxu1 %v3180_v59  ;;  %v466_v54 = vsel %vm3482_vm12, %v452_v52, 0.0  ;;  %v467_v8 = vsel %vm3486_vm6, %v453_v24, 0.0  ;;  %vm3978_vm1 = vcmp.lt.s32.totalorder %v2193_v10, 112  ;;  %1600 = vmatpush1.msra.mxu0 %v3178_v56  ;;  %v1535_v1 = vld [vmem:[%s3818_s4 + $0x18] sm:$0xff] }
 0x442   : > { %v484_v37 = vsel %vm3978_vm1, %v480_v39, %v482_v32  ;;  %vm3979_vm13 = vmmov %vm3978_vm1  ;;  %2006 = vmatpush1.msra.mxu1 %v3178_v56  ;;  %v827_v0 = vmul.f32 %v3182_v35, %v818_v34  ;;  %vm3586_vm3 = vcmp.eq.s32.totalorder %v843_v2, 1  ;;  %vm3590_vm12 = vcmp.eq.s32.totalorder %v847_v17, 1 }
 0x443   : > { %v485_v36 = vsel %vm3979_vm13, %v482_v32, %v480_v39  ;;  %vm3594_vm6 = vcmp.eq.s32.totalorder %v522_v20, 1  ;;  %v445_v18 = vadd.f32 %v443_v15, %v3117_v58  ;;  %v828_v11 = vmul.f32 %v3182_v35, %v819_v7  ;;  %v834_v46 = vpop.permute.xlu0 %833  ;;  %v511_v33 = vpop.permute.xlu1 %510 }
 0x444   : > { %v497_v56 = vsel %vm3503_vm5, %v484_v37, 0.0  ;;  %vm3602_vm11 = vcmp.eq.s32.totalorder %v526_v23, 1  ;;  %v798_v38 = vadd.f32 %v796_v43, %v3171_v61  ;;  %v475_v5 = vmul.f32 %v3168_v51, %v466_v54  ;;  %v3988_v61 = vld [vmem:[#allocation2_spill] sm:$0xff] }
 0x445   : > { %v476_v6 = vmul.f32 %v3168_v51, %v467_v8  ;;  %v498_v12 = vsel %vm3532_vm0, %v485_v36, 0.0  ;;  %v446_v58 = vadd.f32 %v444_v53, %v3119_v30  ;;  %v799_v35 = vadd.f32 %v797_v63, %v3174_v50  ;;  %v3989_v50 = vld [vmem:[#allocation3_spill] sm:$0xff] }
 0x446   : > { %v836_v14 = vsel %vm835_vm10, %v832_v4, %v834_v46  ;;  %v837_v57 = vsel %vm835_vm10, %v834_v46, %v832_v4  ;;  %v829_v29 = vadd.f32 %v827_v0, %v798_v38  ;;  %v506_v31 = vmul.f32 %v3988_v61, %v497_v56 }
 0x447   : > { %v850_v51 = vsel %vm3586_vm3, %v836_v14, 0.0  ;;  %v851_v19 = vsel %vm3590_vm12, %v837_v57, 0.0  ;;  %v830_v27 = vadd.f32 %v828_v11, %v799_v35  ;;  %v507_v30 = vmul.f32 %v3988_v61, %v498_v12  ;;  %v513_v45 = vpop.permute.xlu0 %512 }
 0x448   : > { %v859_v28 = vmul.f32 %v3989_v50, %v850_v51  ;;  %v860_v22 = vmul.f32 %v3989_v50, %v851_v19  ;;  %v477_v3 = vadd.f32 %v475_v5, %v445_v18  ;;  %v478_v49 = vadd.f32 %v476_v6, %v446_v58 }
 0x449   : > { %v515_v41 = vsel %vm514_vm7, %v511_v33, %v513_v45  ;;  %v516_v13 = vsel %vm514_vm7, %v513_v45, %v511_v33  ;;  %vm1560_vm5 = vcmask 261120  }
 0x44a   : > { %v862_v60 = vadd.f32 %v860_v22, %v830_v27  ;;  %v861_v2 = vadd.f32 %v859_v28, %v829_v29  ;;  %v508_v17 = vadd.f32 %v506_v31, %v477_v3  ;;  %v529_v16 = vsel %vm3594_vm6, %v515_v41, 0.0  ;;  %v1543_v52 = vpop.permute.xlu1 %1542 }
 0x44b   : > { %v530_v42 = vsel %vm3602_vm11, %v516_v13, 0.0  ;;  %v509_v25 = vadd.f32 %v507_v30, %v478_v49  ;;  %v538_v39 = vmul.f32 %v3543_v47, %v529_v16  ;;  %v1548_v36 = vpop.permute.xlu0 %1547 }
 0x44c   : > { %v539_v40 = vmul.f32 %v3543_v47, %v530_v42  ;;  %1601 = vmatprep.subr.mxu0 %v862_v60  ;;  %2003 = vmatprep.subr.mxu1 %v862_v60  ;;  %v3990_v47 = vmov 0.0  }
 0x44d   : > { %1602 = vmatpush1.msra.mxu0 %v861_v2  ;;  %2007 = vmatpush1.msra.mxu1 %v861_v2  ;;  %v540_v44 = vadd.f32 %v538_v39, %v508_v17 }
 0x44e   : > { %v541_v10 = vadd.f32 %v539_v40, %v509_v25  ;;  %v1553_v24 = vpop.permute.xlu1 %1552 }
 0x44f   : > { %v1558_v6 = vpop.permute.xlu0 %1557 }
 0x450   : > { %1603 = vmatprep.subr.mxu0 %v541_v10  ;;  %2004 = vmatprep.subr.mxu1 %v541_v10  ;;  %v2120_v10 = vmov -1.0  }
 0x451   : > { %1604 = vmatpush1.msra.mxu0 %v540_v44  ;;  %2008 = vmatpush1.msra.mxu1 %v540_v44 }
 0x452   : > { %1993 = vmatmul.mubr.msk.f32.vlgmr.msra.gmra.mxu0 %vm1560_vm5, %v1532_v62  ;;  %1995 = vmatmul.mubr.msk.f32.vlgmr.msra.gmra.mxu1 %vm1560_vm5, %v1534_v26 }
 0x453   : > { %1643 = vmatprep.mubr.f32.mxu0 %v3990_v47  ;;  %1655 = vmatprep.mubr.f32.mxu1 %v3990_v47 }
 0x456   : > { %1994 = vmatmul.mubr.msk.f32.gmra.mxu0 %vm1560_vm5, %v1533_v55  ;;  %1996 = vmatmul.mubr.msk.f32.gmra.mxu1 %vm1560_vm5, %v1535_v1 }
 0x512   : > { %v1639_v20 = vpop.f32.mrf.mxu0  ;;  %v1651_v15 = vpop.f32.mrf.mxu1 }
 0x513   : > { %v1640_v34 = vadd.f32 %v1639_v20, %v1543_v52  ;;  %v1652_v23 = vadd.f32 %v1651_v15, %v1553_v24 }
 0x514   : > { %v1641_v53 = vpop.f32.mrf.mxu0  ;;  %v1653_v43 = vpop.f32.mrf.mxu1 }
 0x515   : > { %v1670_v63 = vmul.f32 0.70710677, %v1640_v34  ;;  %v3649_v7 = vmul.f32 0.70710677, %v1652_v23  ;;  %v1642_v32 = vadd.f32 %v1641_v53, %v1543_v52  ;;  %v3651_v54 = vadd.f32 %v1653_v43, %v1553_v24 }
 0x516   : > { %v1645_v4 = vpop.f32.mrf.mxu0  ;;  %v1657_v38 = vpop.f32.mrf.mxu1  ;;  %v3681_v2 = vmul.f32 0.5, %v1640_v34  ;;  %v3684_v25 = vmul.f32 0.5, %v1652_v23 }
 0x517   : > { %v1694_v8 = vand.u32 2147483647, %v1670_v63  ;;  %v1698_v37 = vand.u32 2147483647, %v3649_v7  ;;  %v3654_v0 = vmul.f32 0.70710677, %v1642_v32  ;;  %v3661_v58 = vadd.f32 %v1645_v4, %v1548_v36 }
 0x518   : > { %v3658_v18 = vmul.f32 0.70710677, %v3651_v54  ;;  %v1647_v5 = vpop.f32.mrf.mxu0  ;;  %v3663_v35 = vadd.f32 %v1657_v38, %v1558_v6  ;;  %v1659_v30 = vpop.f32.mrf.mxu1  ;;  %vm1678_vm15 = vcmp.ge.f32.partialorder %v1670_v63, 0.0  ;;  %vm1682_vm8 = vcmp.ge.f32.partialorder %v3649_v7, 0.0 }
 0x519   : > { %v1702_v59 = vmul.f32 0.3275911, %v1694_v8  ;;  %v1706_v48 = vmul.f32 0.3275911, %v1698_v37  ;;  %v1695_v9 = vand.u32 2147483647, %v3654_v0  ;;  %v3665_v14 = vadd.f32 %v1647_v5, %v1548_v36 }
 0x51a   : > { %v1699_v46 = vand.u32 2147483647, %v3658_v18  ;;  %v1806_v29 = vsub.f32 0.0, %v1694_v8  ;;  %v3668_v61 = vmul.f32 0.70710677, %v3661_v58  ;;  %v1810_v19 = vsub.f32 0.0, %v1698_v37 }
 0x51b   : > { %v1710_v11 = vadd.f32 1.0, %v1702_v59  ;;  %v1714_v56 = vadd.f32 1.0, %v1706_v48  ;;  %v1703_v21 = vmul.f32 0.3275911, %v1695_v9  ;;  %v3671_v51 = vmul.f32 0.70710677, %v3663_v35 }
 0x51c   : > { %v1707_v57 = vmul.f32 0.3275911, %v1699_v46  ;;  %v1696_v33 = vand.u32 2147483647, %v3668_v61  ;;  %v3675_v27 = vmul.f32 0.70710677, %v3665_v14  ;;  %v1814_v28 = vmul.f32 %v1806_v29, %v1694_v8 }
 0x51d   : > { %2045 = vrcp.f32 %v1710_v11  ;;  %v1711_v12 = vadd.f32 1.0, %v1703_v21  ;;  %v1807_v50 = vsub.f32 0.0, %v1695_v9  ;;  %v1700_v3 = vand.u32 2147483647, %v3671_v51 }
 0x51e   : > { %2047 = vrcp.f32 %v1714_v56  ;;  %v1715_v31 = vadd.f32 1.0, %v1707_v57  ;;  %v1704_v22 = vmul.f32 0.3275911, %v1696_v33  ;;  %v1697_v49 = vand.u32 2147483647, %v3675_v27 }
 0x51f   : > { %2049 = vrcp.f32 %v1711_v12  ;;  %v3679_v45 = vadd.f32 %v1659_v30, %v1558_v6  ;;  %v1818_v41 = vmul.f32 %v1810_v19, %v1698_v37  ;;  %v1708_v60 = vmul.f32 0.3275911, %v1700_v3 }
 0x520   : > { %2051 = vrcp.f32 %v1715_v31  ;;  %v1712_v13 = vadd.f32 1.0, %v1704_v22  ;;  %v1815_v17 = vmul.f32 %v1807_v50, %v1695_v9  ;;  %v1705_v16 = vmul.f32 0.3275911, %v1697_v49 }
 0x521   : > { %v1822_v42 = vmul.f32 1.442695, %v1814_v28  ;;  %v1716_v39 = vadd.f32 1.0, %v1708_v60  ;;  %v3689_v44 = vsel %vm1678_vm15, 1.0, %v2120_v10  ;;  %v1811_v62 = vsub.f32 0.0, %v1699_v46 }
 0x522   : > { %2053 = vrcp.f32 %v1712_v13  ;;  %v1713_v26 = vadd.f32 1.0, %v1705_v16  ;;  %v3692_v47 = vmul.f32 0.70710677, %v3679_v45  ;;  %v3698_v52 = vsel %vm1682_vm8, 1.0, %v2120_v10 }
 0x523   : > { %v1830_v24 = vmul.f32 1.442695, %v1818_v41  ;;  %v3700_v20 = vmul.f32 0.5, %v1642_v32  ;;  %vm1679_vm0 = vcmp.ge.f32.partialorder %v3654_v0, 0.0  ;;  %v1824_v34 = vmul.f32 1.442695, %v1815_v17 }
 0x524   : > { %2055 = vrcp.f32 %v1716_v39  ;;  %v1808_v53 = vsub.f32 0.0, %v1696_v33  ;;  %v1701_v43 = vand.u32 2147483647, %v3692_v47  ;;  %v1819_v8 = vmul.f32 %v1811_v62, %v1699_v46 }
 0x525   : > { %2057 = vpow2.f32 %v1822_v42  ;;  %v1812_v37 = vsub.f32 0.0, %v1700_v3  ;;  %v3713_v48 = vsel %vm1679_vm0, 1.0, %v2120_v10  ;;  %v1809_v9 = vsub.f32 0.0, %v1697_v49 }
 0x526   : > { %2059 = vrcp.f32 %v1713_v26  ;;  %v1709_v4 = vmul.f32 0.3275911, %v1701_v43  ;;  %v1816_v38 = vmul.f32 %v1808_v53, %v1696_v33  ;;  %v1832_v46 = vmul.f32 1.442695, %v1819_v8 }
 0x527   : > { %2061 = vpow2.f32 %v1830_v24  ;;  %v1820_v57 = vmul.f32 %v1812_v37, %v1700_v3  ;;  %v1813_v0 = vsub.f32 0.0, %v1701_v43  ;;  %vm1683_vm9 = vcmp.ge.f32.partialorder %v3658_v18, 0.0 }
 0x528   : > { %2063 = vpow2.f32 %v1824_v34  ;;  %v1717_v5 = vadd.f32 1.0, %v1709_v4  ;;  %v1817_v50 = vmul.f32 %v1809_v9, %v1697_v49  ;;  %v1826_v22 = vmul.f32 1.442695, %v1816_v38 }
 0x529   : > { %v1834_v60 = vmul.f32 1.442695, %v1820_v57  ;;  %v1821_v39 = vmul.f32 %v1813_v0, %v1701_v43  ;;  %v3732_v49 = vsel %vm1683_vm9, 1.0, %v2120_v10  ;;  %vm1680_vm4 = vcmp.ge.f32.partialorder %v3668_v61, 0.0 }
 0x52a   : > { %v3686_v40 = vpop.eup %2045  ;;  %2065 = vrcp.f32 %v1717_v5  ;;  %vm1684_vm14 = vcmp.ge.f32.partialorder %v3671_v51, 0.0  ;;  %vm1681_vm2 = vcmp.ge.f32.partialorder %v3675_v27, 0.0  ;;  %vm1685_vm10 = vcmp.ge.f32.partialorder %v3692_v47, 0.0 }
 0x52b   : > { %v3694_v55 = vpop.eup %2047  ;;  %v1734_v1 = vmul.f32 1.0614054, %v3686_v40  ;;  %2067 = vpow2.f32 %v1832_v46  ;;  %v1836_v4 = vmul.f32 1.442695, %v1821_v39  ;;  %v1669_v47 = vmul.f32 0.5, %v3679_v45 }
 0x52c   : > { %v1738_v15 = vmul.f32 1.0614054, %v3694_v55  ;;  %v3705_v63 = vpop.eup %2049  ;;  %2069 = vpow2.f32 %v1826_v22 }
 0x52d   : > { %v1742_v23 = vadd.f32 -1.4531521, %v1734_v1  ;;  %v1735_v36 = vmul.f32 1.0614054, %v3705_v63  ;;  %v3715_v11 = vpop.eup %2051  ;;  %v1828_v1 = vmul.f32 1.442695, %v1817_v50  ;;  %2071 = vpow2.f32 %v1834_v60 }
 0x52e   : > { %v1746_v7 = vadd.f32 -1.4531521, %v1738_v15  ;;  %v1739_v12 = vmul.f32 1.0614054, %v3715_v11 }
 0x52f   : > { %v1750_v32 = vmul.f32 %v3686_v40, %v1742_v23  ;;  %v1743_v21 = vadd.f32 -1.4531521, %v1735_v36  ;;  %v3722_v41 = vpop.eup %2053  ;;  %2073 = vpow2.f32 %v1828_v1 }
 0x530   : > { %v1754_v59 = vmul.f32 %v3694_v55, %v1746_v7  ;;  %v1747_v30 = vadd.f32 -1.4531521, %v1739_v12  ;;  %v1736_v42 = vmul.f32 1.0614054, %v3722_v41  ;;  %2075 = vpow2.f32 %v1836_v4 }
 0x531   : > { %v1758_v56 = vadd.f32 1.4214138, %v1750_v32  ;;  %v1751_v31 = vmul.f32 %v3705_v63, %v1743_v21  ;;  %v3734_v24 = vpop.eup %2055 }
 0x532   : > { %v1762_v6 = vadd.f32 1.4214138, %v1754_v59  ;;  %v1755_v3 = vmul.f32 %v3715_v11, %v1747_v30  ;;  %v1744_v23 = vadd.f32 -1.4531521, %v1736_v42  ;;  %v2058_v53 = vpop.eup %2057  ;;  %v1740_v43 = vmul.f32 1.0614054, %v3734_v24 }
 0x533   : > { %v1766_v29 = vmul.f32 %v3686_v40, %v1758_v56  ;;  %v1759_v33 = vadd.f32 1.4214138, %v1751_v31  ;;  %v3738_v37 = vpop.eup %2059 }
 0x534   : > { %v1770_v19 = vmul.f32 %v3694_v55, %v1762_v6  ;;  %v1763_v26 = vadd.f32 1.4214138, %v1755_v3  ;;  %v1752_v36 = vmul.f32 %v3722_v41, %v1744_v23  ;;  %v2062_v59 = vpop.eup %2061  ;;  %v1748_v21 = vadd.f32 -1.4531521, %v1740_v43 }
 0x535   : > { %v1774_v28 = vadd.f32 -0.28449672, %v1766_v29  ;;  %v1767_v16 = vmul.f32 %v3705_v63, %v1759_v33  ;;  %v1737_v38 = vmul.f32 1.0614054, %v3738_v37  ;;  %v2064_v5 = vpop.eup %2063 }
 0x536   : > { %v1778_v13 = vadd.f32 -0.28449672, %v1770_v19  ;;  %v1771_v8 = vmul.f32 %v3715_v11, %v1763_v26  ;;  %v1760_v46 = vadd.f32 1.4214138, %v1752_v36  ;;  %v1756_v29 = vmul.f32 %v3734_v24, %v1748_v21 }
 0x537   : > { %v1782_v17 = vmul.f32 %v3686_v40, %v1774_v28  ;;  %v1775_v34 = vadd.f32 -0.28449672, %v1767_v16  ;;  %v1745_v31 = vadd.f32 -1.4531521, %v1737_v38  ;;  %v3749_v30 = vpop.eup %2065 }
 0x538   : > { %v1786_v62 = vmul.f32 %v3694_v55, %v1778_v13  ;;  %v1779_v56 = vadd.f32 -0.28449672, %v1771_v8  ;;  %v1764_v33 = vadd.f32 1.4214138, %v1756_v29 }
 0x539   : > { %v1790_v15 = vadd.f32 0.2548296, %v1782_v17  ;;  %v1783_v32 = vmul.f32 %v3705_v63, %v1775_v34  ;;  %v1753_v22 = vmul.f32 %v3738_v37, %v1745_v31  ;;  %v1741_v17 = vmul.f32 1.0614054, %v3749_v30 }
 0x53a   : > { %v1794_v7 = vadd.f32 0.2548296, %v1786_v62  ;;  %v1772_v42 = vmul.f32 %v3734_v24, %v1764_v33  ;;  %v2068_v62 = vpop.eup %2067 }
 0x53b   : > { %v1798_v18 = vmul.f32 %v3686_v40, %v1790_v15  ;;  %v1791_v12 = vadd.f32 0.2548296, %v1783_v32  ;;  %v1787_v40 = vmul.f32 %v3715_v11, %v1779_v56  ;;  %v1761_v39 = vadd.f32 1.4214138, %v1753_v22 }
 0x53c   : > { %v1802_v9 = vmul.f32 %v3694_v55, %v1794_v7  ;;  %v1768_v55 = vmul.f32 %v3722_v41, %v1760_v46  ;;  %v1749_v34 = vadd.f32 -1.4531521, %v1741_v17  ;;  %v2082_v17 = vld [vmem:[%s2174_s26 + $0x28] sm:$0xff] }
 0x53d   : > { %v1838_v6 = vmul.f32 %v2058_v53, %v1798_v18  ;;  %v1799_v19 = vmul.f32 %v3705_v63, %v1791_v12  ;;  %v1795_v28 = vadd.f32 0.2548296, %v1787_v40  ;;  %v1780_v53 = vadd.f32 -0.28449672, %v1772_v42  ;;  %v2070_v18 = vpop.eup %2069 }
 0x53e   : > { %v1842_v57 = vmul.f32 %v2062_v59, %v1802_v9  ;;  %v1776_v60 = vadd.f32 -0.28449672, %v1768_v55  ;;  %v1769_v7 = vmul.f32 %v3738_v37, %v1761_v39  ;;  %v1757_v43 = vmul.f32 %v3749_v30, %v1749_v34  ;;  %v2072_v59 = vpop.eup %2071 }
 0x53f   : > { %v1846_v0 = vsub.f32 1.0, %v1838_v6  ;;  %v1839_v3 = vmul.f32 %v2064_v5, %v1799_v19  ;;  %v1803_v16 = vmul.f32 %v3715_v11, %v1795_v28  ;;  %v1788_v4 = vmul.f32 %v3734_v24, %v1780_v53  ;;  %v2080_v5 = vld [vmem:[%s2174_s26 + $0x20] sm:$0xff]  ;;  %v2074_v31 = vpop.eup %2073 }
 0x540   : > { %v1850_v50 = vsub.f32 1.0, %v1842_v57  ;;  %v1784_v15 = vmul.f32 %v3722_v41, %v1776_v60  ;;  %v1765_v38 = vadd.f32 1.4214138, %v1757_v43  ;;  %v1688_v28 = vsel %vm1680_vm4, 1.0, %v2120_v10  ;;  %v2076_v22 = vpop.eup %2075  ;;  %v2084_v43 = vld [vmem:[%s2174_s26 + $0x30] sm:$0xff] }
 0x541   : > { %v1854_v13 = vmul.f32 %v1846_v0, %v3689_v44  ;;  %v1847_v1 = vsub.f32 1.0, %v1839_v3  ;;  %v1843_v23 = vmul.f32 %v2068_v62, %v1803_v16  ;;  %v1796_v46 = vadd.f32 0.2548296, %v1788_v4  ;;  %v2085_v4 = vld [vmem:[%s2174_s26 + $0x18] sm:$0xff] }
 0x542   : > { %v1858_v63 = vmul.f32 %v1850_v50, %v3698_v52  ;;  %v1792_v8 = vadd.f32 0.2548296, %v1784_v15  ;;  %v1773_v29 = vmul.f32 %v3749_v30, %v1765_v38  ;;  %v1664_v42 = vmul.f32 0.5, %v3661_v58  ;;  %v2083_v58 = vld [vmem:[%s2174_s26 + $0x10] sm:$0xff] }
 0x543   : > { %v1862_v26 = vadd.f32 1.0, %v1854_v13  ;;  %v1855_v11 = vmul.f32 %v1847_v1, %v3713_v48  ;;  %v1851_v36 = vsub.f32 1.0, %v1843_v23  ;;  %v2079_v48 = vld [vmem:[%s2174_s26] sm:$0xff]  ;;  %v1804_v19 = vmul.f32 %v3734_v24, %v1796_v46 }
 0x544   : > { %v1866_v44 = vadd.f32 1.0, %v1858_v63  ;;  %v1800_v21 = vmul.f32 %v3722_v41, %v1792_v8  ;;  %v1667_v41 = vmul.f32 0.5, %v3651_v54  ;;  %v1781_v33 = vadd.f32 -0.28449672, %v1773_v29 }
 0x545   : > { %v1870_v52 = vmul.f32 %v1862_v26, %v3681_v2  ;;  %v1777_v2 = vadd.f32 -0.28449672, %v1769_v7  ;;  %v1863_v56 = vadd.f32 1.0, %v1855_v11  ;;  %v1859_v12 = vmul.f32 %v1851_v36, %v3732_v49  ;;  %v2081_v49 = vld [vmem:[%s2174_s26 + $0x8] sm:$0xff] }
 0x546   : > { %v1874_v32 = vmul.f32 %v1866_v44, %v3684_v25  ;;  %v1840_v40 = vmul.f32 %v2070_v18, %v1800_v21  ;;  %v1844_v3 = vmul.f32 %v2072_v59, %v1804_v19  ;;  %v1789_v24 = vmul.f32 %v3749_v30, %v1781_v33 }
 0x547   : > { %v1878_v9 = vmul.f32 %v2079_v48, %v1870_v52  ;;  %v1785_v25 = vmul.f32 %v3738_v37, %v1777_v2  ;;  %v1871_v57 = vmul.f32 %v1863_v56, %v3700_v20  ;;  %v1867_v0 = vadd.f32 1.0, %v1859_v12 }
 0x548   : > { %v1882_v6 = vmul.f32 %v2080_v5, %v1874_v32  ;;  %v1848_v20 = vsub.f32 1.0, %v1840_v40  ;;  %v1852_v16 = vsub.f32 1.0, %v1844_v3  ;;  %v1692_v62 = vsel %vm1684_vm14, 1.0, %v2120_v10 }
 0x549   : > { %1886 = vst [vmem:[%s3768_s9] sm:$0xff] %v1878_v9  ;;  %v1793_v55 = vadd.f32 0.2548296, %v1785_v25  ;;  %v1879_v50 = vmul.f32 %v2081_v49, %v1871_v57  ;;  %v1875_v13 = vmul.f32 %v1867_v0, %v1667_v41  ;;  %v1797_v51 = vadd.f32 0.2548296, %v1789_v24 }
 0x54a   : > { %1890 = vst [vmem:[%s3768_s9 + $0x20] sm:$0xff] %v1882_v6  ;;  %v1856_v60 = vmul.f32 %v1848_v20, %v1688_v28  ;;  %v1689_v15 = vsel %vm1681_vm2, 1.0, %v2120_v10  ;;  %v1668_v44 = vmul.f32 0.5, %v3663_v35  ;;  %v1665_v11 = vmul.f32 0.5, %v3665_v14  ;;  %v2086_v14 = vld [vmem:[%s2174_s26 + $0x38] sm:$0xff] }
 0x54b   : > { %v1801_v54 = vmul.f32 %v3738_v37, %v1793_v55  ;;  %1887 = vst [vmem:[%s3768_s9 + $0x8] sm:$0xff] %v1879_v50  ;;  %v1883_v63 = vmul.f32 %v2082_v17, %v1875_v13  ;;  %v1860_v37 = vmul.f32 %v1852_v16, %v1692_v62  ;;  %v1805_v34 = vmul.f32 %v3749_v30, %v1797_v51 }
 0x54c   : > { %v1864_v39 = vadd.f32 1.0, %v1856_v60  ;;  %v1693_v32 = vsel %vm1685_vm10, 1.0, %v2120_v10 }
 0x54d   : > { %v1841_v61 = vmul.f32 %v2074_v31, %v1801_v54  ;;  %1891 = vst [vmem:[%s3768_s9 + $0x28] sm:$0xff] %v1883_v63  ;;  %v1868_v27 = vadd.f32 1.0, %v1860_v37  ;;  %v1845_v7 = vmul.f32 %v2076_v22, %v1805_v34 }
 0x54e   : > { %v1872_v1 = vmul.f32 %v1864_v39, %v1664_v42 }
 0x54f   : > { %v1849_v26 = vsub.f32 1.0, %v1841_v61  ;;  %v1876_v52 = vmul.f32 %v1868_v27, %v1668_v44  ;;  %v1853_v30 = vsub.f32 1.0, %v1845_v7 }
 0x550   : > { %v1880_v53 = vmul.f32 %v2083_v58, %v1872_v1 }
 0x551   : > { %v1857_v23 = vmul.f32 %v1849_v26, %v1689_v15  ;;  %v1884_v35 = vmul.f32 %v2084_v43, %v1876_v52  ;;  %v1861_v36 = vmul.f32 %v1853_v30, %v1693_v32 }
 0x552   : > { %1888 = vst [vmem:[%s3768_s9 + $0x10] sm:$0xff] %v1880_v53 }
 0x553   : > { %v1865_v8 = vadd.f32 1.0, %v1857_v23  ;;  %1892 = vst [vmem:[%s3768_s9 + $0x30] sm:$0xff] %v1884_v35  ;;  %v1869_v59 = vadd.f32 1.0, %v1861_v36 }
 0x555   : > { %v1873_v18 = vmul.f32 %v1865_v8, %v1665_v11  ;;  %v1877_v48 = vmul.f32 %v1869_v59, %v1669_v47 }
 0x557   : > { %v1881_v2 = vmul.f32 %v2085_v4, %v1873_v18  ;;  %v1885_v9 = vmul.f32 %v2086_v14, %v1877_v48 }
 0x559   : > { %1889 = vst [vmem:[%s3768_s9 + $0x18] sm:$0xff] %v1881_v2  ;;  %1893 = vst [vmem:[%s3768_s9 + $0x38] sm:$0xff] %v1885_v9 }
 0x55a PF: > { %s16_s21 = sadd.s32 1, %s2093_s21  }
 0x55b   : > { %p13_p4 = scmp.ge.s32.totalorder %s16_s21, 4  }
 0x55d   :  { %15 = sbr.rel (!%p13_p4) target bundleno = 1 (0x1), region = 109 }

</bundles_post_ra>
